<compile_context>
chip_gen: v7x
topology: tpu7x:2x2x1
jax: 0.10.0
libtpu: 0.0.40
codegen_flags: <defaults>
</compile_context>

<pallas_src>
import functools

import numpy as np
import jax
import jax.numpy as jnp
from jax.experimental import pallas as pl
from jax.experimental.pallas import tpu as pltpu


def _round_up(x, m):
    return ((x + m - 1) // m) * m


def _vmem_capacity_bytes():
    """Physical per-core VMEM (v5e/v6e: 128 MiB, v7x: 64 MiB); conservative fallback."""
    try:
        info = pltpu.get_tpu_info()
        for attr in ("vmem_capacity_bytes", "vmem_size_bytes", "vmem_bytes"):
            v = getattr(info, attr, None)
            if v:
                return int(v)
    except Exception:
        pass
    return 64 * 1024 * 1024


def _pick_tm(ck_pad, p_pad, budget_bytes):
    """Largest M-tile that keeps (resident W_enc + X double-buffers + argmax temps) in VMEM."""
    resident = ck_pad * p_pad * 2                      # single-buffered bf16 W_enc
    for tm in (512, 256, 128):
        need = (resident
                + 2 * tm * ck_pad * 2                  # double-buffered bf16 X tiles
                + 2 * tm * 4                           # double-buffered idx tiles
                + 3 * tm * p_pad * 4)                  # f32 similarity + argmax temps
        if need <= int(budget_bytes * 0.75):           # headroom for compiler scratch
            return tm
    return 128


def _extract_patches(act_nchw, patchsize, stride):
    # act_nchw: [1, C, Hs, Ws] -> patches [npatches, C, k, k]
    # Matches torch: unfold(2,k,s).unfold(3,k,s).squeeze().permute(1,2,0,3,4).view(...)
    a = act_nchw[0]
    C, Hs, Ws = a.shape
    hp = (Hs - patchsize) // stride + 1
    wp = (Ws - patchsize) // stride + 1
    ii = jnp.arange(hp)[:, None] * stride + jnp.arange(patchsize)[None, :]   # [hp, k]
    jj = jnp.arange(wp)[:, None] * stride + jnp.arange(patchsize)[None, :]   # [wp, k]
    p = a[:, ii[:, None, :, None], jj[None, :, None, :]]                     # [C, hp, wp, k, k]
    p = jnp.transpose(p, (1, 2, 0, 3, 4)).reshape(hp * wp, C, patchsize, patchsize)
    return p


def _sim_argmax_kernel(x_ref, wenc_ref, idx_ref, *, p_valid: int):
    """One M-tile: similarity = X_tile @ W_enc on the MXU, then first-index argmax.

    x_ref:    [TM, CK_pad]    bf16 (im2col rows for TM output positions)
    wenc_ref: [CK_pad, P_pad] bf16 (resident encoder weights; padded cols are zero)
    idx_ref:  [TM, 1]         int32 (selected style-patch index per position)
    """
    s = jnp.dot(x_ref[...], wenc_ref[...], preferred_element_type=jnp.float32)  # [TM, P_pad]
    # Single iota row; broadcasting covers the TM rows (no per-step TM x P_pad iota).
    col = jax.lax.broadcasted_iota(jnp.int32, (1, s.shape[1]), 1)                # [1, P_pad]
    # Padded P lanes carry similarity 0 (zero weights); mask them so they never win.
    s = jnp.where(col < p_valid, s, jnp.float32(-3.0e38))
    # First-index argmax (torch.max tie-break): max, then min column index hitting it.
    m = jnp.max(s, axis=1, keepdims=True)
    idx = jnp.min(jnp.where(s == m, col, s.shape[1]), axis=1, keepdims=True)
    idx_ref[...] = idx.astype(jnp.int32)


def _row_gather_kernel(idx_ref, wdec_ref, y_ref):
    # idx_ref lives in SMEM (scalar prefetch); the row selection already happened in the
    # BlockSpec index_map, so the body is a pure copy of the selected W_dec row.
    del idx_ref
    y_ref[...] = wdec_ref[...]


class StyleSwapPallas:
    """JAX/Pallas re-implementation of STYLESWAP.forward (batch size 1, NCHW I/O)."""

    def __init__(self, styleactivation, shuffle=False, patchsize=3, stride=1,
                 shuffle_key=None, block_m=None):
        self.patchsize = patchsize
        self.stride = stride
        self.block_m = block_m            # None -> auto-size from VMEM capacity
        self.channel = int(styleactivation.shape[1])

        patches = _extract_patches(styleactivation, patchsize, stride)  # [P, C, k, k]
        if shuffle:
            key = shuffle_key if shuffle_key is not None else jax.random.PRNGKey(1234)
            perm = jax.random.permutation(key, patches.shape[0])
            patches = patches[perm]
        self.target_patches = patches
        self.npatches = int(patches.shape[0])
        P, C, k, _ = patches.shape
        CK = C * k * k

        # NOTE: the reference uses non-inplace `.mul(...)` when "normalizing" enc_patches,
        # so conv_enc weights are the *unnormalized* patches; reproduced faithfully.
        self.ck = CK
        self.ck_pad = _round_up(CK, 128)
        self.p_pad = _round_up(P, 128)

        w_enc = patches.reshape(P, CK).T.astype(jnp.float32)                      # [CK, P]
        self.w_enc_pad = jnp.pad(
            w_enc, ((0, self.ck_pad - CK), (0, self.p_pad - P))).astype(jnp.bfloat16)

        # Decoder "weights" = patch rows; decode is an exact f32 row gather.
        w_dec = patches.reshape(P, CK).astype(jnp.float32)                        # [P, CK]
        self.w_dec_rows_pad = jnp.pad(w_dec, ((0, 0), (0, self.ck_pad - CK)))[:, None, :]

        self._inv_wei_cache = {}  # (Hdec, Wdec) -> reciprocal overlap counts

    # ----- overlap-count normalization (aux ConvTranspose of a one-hot) -----------------
    def _inv_overlap(self, Hout, Wout):
        k, s = self.patchsize, self.stride
        Hdec = (Hout - 1) * s + k
        Wdec = (Wout - 1) * s + k
        key = (Hdec, Wdec)
        if key not in self._inv_wei_cache:
            cy = np.zeros(Hdec, np.float32)
            cx = np.zeros(Wdec, np.float32)
            for kk in range(k):
                cy[kk:kk + Hout * s:s] += 1.0
                cx[kk:kk + Wout * s:s] += 1.0
            counts = cy[:, None] * cx[None, :]                                    # [Hdec, Wdec]
            self._inv_wei_cache[key] = jnp.asarray(1.0 / counts)
        return self._inv_wei_cache[key], Hdec, Wdec

    # ----- similarity + argmax Pallas call -------------------------------------------------
    def _sim_argmax(self, X_pad, TM, M_pad, num_tiles, CK_pad, P_pad, P, vmem_limit):
        def build(wenc_spec):
            return pl.pallas_call(
                functools.partial(_sim_argmax_kernel, p_valid=P),
                out_shape=jax.ShapeDtypeStruct((M_pad, 1), jnp.int32),
                grid=(num_tiles,),
                in_specs=[
                    pl.BlockSpec((TM, CK_pad), lambda i: (i, 0)),   # X tile (double-buffered)
                    wenc_spec,                                      # W_enc resident
                ],
                out_specs=pl.BlockSpec((TM, 1), lambda i: (i, 0)),
                compiler_params=pltpu.CompilerParams(
                    dimension_semantics=("parallel",),
                    vmem_limit_bytes=vmem_limit,
                ),
                cost_estimate=pl.CostEstimate(
                    flops=2 * M_pad * CK_pad * P_pad,
                    transcendentals=0,
                    bytes_accessed=M_pad * CK_pad * 2 + CK_pad * P_pad * 2 + M_pad * 4,
                ),
            )

        # Single-buffer the constant W_enc block (its block index never changes); fall back
        # to the default double-buffered spec if this jax version rejects Buffered(1).
        try:
            wenc_spec = pl.BlockSpec((CK_pad, P_pad), lambda i: (0, 0),
                                     pipeline_mode=pl.Buffered(1))
            return build(wenc_spec)(X_pad, self.w_enc_pad)
        except Exception:
            wenc_spec = pl.BlockSpec((CK_pad, P_pad), lambda i: (0, 0))
            return build(wenc_spec)(X_pad, self.w_enc_pad)

    # ----- forward ------------------------------------------------------------------------
    def __call__(self, x):
        # x: [1, C, H, W] (the reference forward only fills batch index 0)
        _, C, H, W = x.shape
        k, s = self.patchsize, self.stride
        Hout = (H - k) // s + 1
        Wout = (W - k) // s + 1
        M = Hout * Wout
        CK, CK_pad, P, P_pad = self.ck, self.ck_pad, self.npatches, self.p_pad

        # Per-generation VMEM budgeting (v7x: 64 MiB, v5e/v6e: 128 MiB).
        cap = _vmem_capacity_bytes()
        budget = int(cap * 0.85)
        TM = self.block_m if self.block_m is not None else _pick_tm(CK_pad, P_pad, budget)
        TM = max(128, min(TM, _round_up(M, 128)))        # don't over-pad tiny inputs
        M_pad = _round_up(M, TM)
        num_tiles = M_pad // TM

        # im2col directly in bf16 (rows = output positions i*Wout+j, cols = (c, ky, kx)).
        xp = jax.lax.conv_general_dilated_patches(
            x.astype(jnp.bfloat16), (k, k), (s, s), 'VALID',
            dimension_numbers=('NCHW', 'OIHW', 'NCHW'))           # [1, C*k*k, Hout, Wout]
        X = xp[0].reshape(CK, M).T                                 # [M, CK] bf16
        X_pad = jnp.pad(X, ((0, M_pad - M), (0, CK_pad - CK)))

        vmem_est = (CK_pad * P_pad * 2            # resident W_enc (single-buffered bf16)
                    + 2 * TM * CK_pad * 2         # double-buffered X tiles
                    + 2 * TM * 4                  # idx tiles
                    + 3 * TM * P_pad * 4)         # similarity + argmax temps (f32)
        vmem_limit = min(budget, max(2 * vmem_est, 16 * 1024 * 1024))

        idx_pad = self._sim_argmax(X_pad, TM, M_pad, num_tiles, CK_pad, P_pad, P, vmem_limit)
        idx = idx_pad[:M, 0]                                       # [M] selected patch ids

        # Decode = Pallas scalar-prefetch row gather of the selected f32 style patch.
        y_pad = pl.pallas_call(
            _row_gather_kernel,
            out_shape=jax.ShapeDtypeStruct((M, 1, CK_pad), jnp.float32),
            grid_spec=pltpu.PrefetchScalarGridSpec(
                num_scalar_prefetch=1,
                grid=(M,),
                in_specs=[pl.BlockSpec((1, 1, CK_pad),
                                       lambda i, idx_ref: (idx_ref[i], 0, 0))],
                out_specs=pl.BlockSpec((1, 1, CK_pad),
                                       lambda i, idx_ref: (i, 0, 0)),
            ),
            compiler_params=pltpu.CompilerParams(dimension_semantics=("arbitrary",)),
        )(idx, self.w_dec_rows_pad)
        y = y_pad[:, 0, :CK]                                       # [M, CK] f32
        yr = y.reshape(Hout, Wout, C, k, k)

        # col2im (ConvTranspose2d scatter-add) as a single pad-and-sum: each (ky, kx) slice
        # is placed by lax.pad (interior dilation = stride-1) and the k*k terms are summed
        # once, then normalized by the precomputed reciprocal overlap count.
        inv_wei, Hdec, Wdec = self._inv_overlap(Hout, Wout)
        zero = jnp.array(0.0, jnp.float32)
        terms = []
        for ky in range(k):
            for kx in range(k):
                plane = jnp.transpose(yr[:, :, :, ky, kx], (2, 0, 1))   # [C, Hout, Wout]
                cfg = ((0, 0, 0),
                       (ky, Hdec - (ky + (Hout - 1) * s + 1), s - 1),
                       (kx, Wdec - (kx + (Wout - 1) * s + 1), s - 1))
                terms.append(jax.lax.pad(plane, zero, cfg))
        swap = functools.reduce(lambda a, b: a + b, terms)
        out = swap * inv_wei[None, :, :]                            # swap.div(swap_wei)
        return out[None]                                            # [1, C, Hdec, Wdec]


if __name__ == "__main__":
    key = jax.random.PRNGKey(0)
    k1, k2 = jax.random.split(key)
    # Deterministic synthetic "style activation" (defines the patch bank) and input.
    styleactivation = jax.random.normal(k1, (1, 4, 8, 8), dtype=jnp.float32)   # -> 36 patches 4x3x3
    x = jax.random.normal(k2, (1, 4, 16, 16), dtype=jnp.float32)               # forward implies batch=1

    model = StyleSwapPallas(styleactivation, shuffle=False)
    out = model(x)
    out = jax.block_until_ready(out)

    assert out.shape == (1, 4, 16, 16), out.shape
    assert bool(jnp.all(jnp.isfinite(out)))
    print("KERNEL_OK")
</pallas_src>

<mosaic_0001>
module attributes {stable_mosaic.version = 11 : i64} {
  func.func @_sim_argmax_kernel(%arg0: i32, %arg1: memref<256x128xbf16, #tpu.memory_space<vmem>>, %arg2: memref<128x128xbf16, #tpu.memory_space<vmem>>, %arg3: memref<256x1xi32, #tpu.memory_space<vmem>>) attributes {dimension_semantics = [#tpu.dimension_semantics<parallel>], iteration_bounds = array<i64: 1>, scalar_prefetch = 0 : i64, scratch_operands = 0 : i64, tpu.core_type = #tpu.core_type<tc>, window_params = [{transform_indices = @transform_0, window_bounds = array<i64: 256, 128>}, {pipeline_mode = #tpu.pipeline_mode<synchronous>, transform_indices = @transform_1, window_bounds = array<i64: 128, 128>}, {transform_indices = @transform_2, window_bounds = array<i64: 256, 1>}]} {
    %c0 = arith.constant 0 : index
    %c0_0 = arith.constant 0 : index
    %0 = vector.load %arg1[%c0, %c0_0] : memref<256x128xbf16, #tpu.memory_space<vmem>>, vector<256x128xbf16>
    %c0_1 = arith.constant 0 : index
    %c0_2 = arith.constant 0 : index
    %1 = vector.load %arg2[%c0_1, %c0_2] : memref<128x128xbf16, #tpu.memory_space<vmem>>, vector<128x128xbf16>
    %cst = arith.constant dense<0.000000e+00> : vector<256x128xf32>
    %2 = tpu.matmul %0, %1, %cst {dimension_numbers = #tpu.dot_dimension_numbers<[1], [0], [0], [1], [0, 0, 1, 1], [], []>} : vector<256x128xbf16>, vector<128x128xbf16>, vector<256x128xf32> -> vector<256x128xf32>
    %3 = tpu.iota {dimensions = array<i32: 1>} : vector<1x128xi32>
    %c36_i32 = arith.constant 36 : i32
    %4 = vector.broadcast %c36_i32 : i32 to vector<1x128xi32>
    %5 = arith.cmpi slt, %3, %4 : vector<1x128xi32>
    %cst_3 = arith.constant -3.000000e+38 : f32
    %6 = vector.shape_cast %5 : vector<1x128xi1> to vector<1x128xi1>
    %7 = vector.broadcast %6 : vector<1x128xi1> to vector<256x128xi1>
    %8 = vector.broadcast %cst_3 : f32 to vector<256x128xf32>
    %9 = arith.select %7, %2, %8 : vector<256x128xi1>, vector<256x128xf32>
    %cst_4 = arith.constant dense<0xFF800000> : vector<256xf32>
    %10 = vector.multi_reduction <maximumf>, %9, %cst_4 [1] : vector<256x128xf32> to vector<256xf32>
    %11 = vector.shape_cast %10 : vector<256xf32> to vector<256x1xf32>
    %12 = vector.broadcast %11 : vector<256x1xf32> to vector<256x128xf32>
    %13 = arith.cmpf oeq, %9, %12 : vector<256x128xf32>
    %c128_i32 = arith.constant 128 : i32
    %14 = vector.shape_cast %3 : vector<1x128xi32> to vector<1x128xi32>
    %15 = vector.broadcast %14 : vector<1x128xi32> to vector<256x128xi32>
    %16 = vector.broadcast %c128_i32 : i32 to vector<256x128xi32>
    %17 = arith.select %13, %15, %16 : vector<256x128xi1>, vector<256x128xi32>
    %cst_5 = arith.constant dense<2147483647> : vector<256xi32>
    %18 = vector.multi_reduction <minsi>, %17, %cst_5 [1] : vector<256x128xi32> to vector<256xi32>
    %19 = vector.shape_cast %18 : vector<256xi32> to vector<256x1xi32>
    %c0_6 = arith.constant 0 : index
    %c0_7 = arith.constant 0 : index
    %20 = vector.load %arg3[%c0_6, %c0_7] : memref<256x1xi32, #tpu.memory_space<vmem>>, vector<256x1xi32>
    tpu.vector_store %arg3[%c0_6, %c0_7], %19 {strides = array<i32>} : memref<256x1xi32, #tpu.memory_space<vmem>>, vector<256x1xi32>,
    return
  }
  func.func @transform_0(%arg0: i32) -> (i32, i32) {
    %c0_i32 = arith.constant 0 : i32
    %c0_i32_0 = arith.constant 0 : i32
    return %arg0, %c0_i32 : i32, i32
  }
  func.func @transform_1(%arg0: i32) -> (i32, i32) {
    %c0_i32 = arith.constant 0 : i32
    %c0_i32_0 = arith.constant 0 : i32
    %c0_i32_1 = arith.constant 0 : i32
    return %c0_i32, %c0_i32_0 : i32, i32
  }
  func.func @transform_2(%arg0: i32) -> (i32, i32) {
    %c0_i32 = arith.constant 0 : i32
    %c0_i32_0 = arith.constant 0 : i32
    return %arg0, %c0_i32 : i32, i32
  }
}

module attributes {stable_mosaic.version = 11 : i64} {
  func.func @_sim_argmax_kernel(%arg0: i32, %arg1: memref<256x128xbf16, #tpu.memory_space<vmem>>, %arg2: memref<128x128xbf16, #tpu.memory_space<vmem>>, %arg3: memref<256x1xi32, #tpu.memory_space<vmem>>) attributes {dimension_semantics = [#tpu.dimension_semantics<parallel>], iteration_bounds = array<i64: 1>, scalar_prefetch = 0 : i64, scratch_operands = 0 : i64, tpu.core_type = #tpu.core_type<tc>, window_params = [{transform_indices = @transform_0, window_bounds = array<i64: 256, 128>}, {pipeline_mode = #tpu.pipeline_mode<synchronous>, transform_indices = @transform_1, window_bounds = array<i64: 128, 128>}, {transform_indices = @transform_2, window_bounds = array<i64: 256, 1>}]} {
    %c0 = arith.constant 0 : index
    %c0_0 = arith.constant 0 : index
    %0 = vector.load %arg1[%c0, %c0_0] : memref<256x128xbf16, #tpu.memory_space<vmem>>, vector<256x128xbf16>
    %c0_1 = arith.constant 0 : index
    %c0_2 = arith.constant 0 : index
    %1 = vector.load %arg2[%c0_1, %c0_2] : memref<128x128xbf16, #tpu.memory_space<vmem>>, vector<128x128xbf16>
    %cst = arith.constant dense<0.000000e+00> : vector<256x128xf32>
    %2 = tpu.matmul %0, %1, %cst {dimension_numbers = #tpu.dot_dimension_numbers<[1], [0], [0], [1], [0, 0, 1, 1], [], []>} : vector<256x128xbf16>, vector<128x128xbf16>, vector<256x128xf32> -> vector<256x128xf32>
    %3 = tpu.iota {dimensions = array<i32: 1>} : vector<1x128xi32>
    %c36_i32 = arith.constant 36 : i32
    %4 = vector.broadcast %c36_i32 : i32 to vector<1x128xi32>
    %5 = arith.cmpi slt, %3, %4 : vector<1x128xi32>
    %cst_3 = arith.constant -3.000000e+38 : f32
    %6 = vector.shape_cast %5 : vector<1x128xi1> to vector<1x128xi1>
    %7 = vector.broadcast %6 : vector<1x128xi1> to vector<256x128xi1>
    %8 = vector.broadcast %cst_3 : f32 to vector<256x128xf32>
    %9 = arith.select %7, %2, %8 : vector<256x128xi1>, vector<256x128xf32>
    %cst_4 = arith.constant dense<0xFF800000> : vector<256xf32>
    %10 = vector.multi_reduction <maximumf>, %9, %cst_4 [1] : vector<256x128xf32> to vector<256xf32>
    %11 = vector.shape_cast %10 : vector<256xf32> to vector<256x1xf32>
    %12 = vector.broadcast %11 : vector<256x1xf32> to vector<256x128xf32>
    %13 = arith.cmpf oeq, %9, %12 : vector<256x128xf32>
    %c128_i32 = arith.constant 128 : i32
    %14 = vector.shape_cast %3 : vector<1x128xi32> to vector<1x128xi32>
    %15 = vector.broadcast %14 : vector<1x128xi32> to vector<256x128xi32>
    %16 = vector.broadcast %c128_i32 : i32 to vector<256x128xi32>
    %17 = arith.select %13, %15, %16 : vector<256x128xi1>, vector<256x128xi32>
    %cst_5 = arith.constant dense<2147483647> : vector<256xi32>
    %18 = vector.multi_reduction <minsi>, %17, %cst_5 [1] : vector<256x128xi32> to vector<256xi32>
    %19 = vector.shape_cast %18 : vector<256xi32> to vector<256x1xi32>
    %c0_6 = arith.constant 0 : index
    %c0_7 = arith.constant 0 : index
    %20 = vector.load %arg3[%c0_6, %c0_7] : memref<256x1xi32, #tpu.memory_space<vmem>>, vector<256x1xi32>
    tpu.vector_store %arg3[%c0_6, %c0_7], %19 {strides = array<i32>} : memref<256x1xi32, #tpu.memory_space<vmem>>, vector<256x1xi32>,
    return
  }
  func.func @transform_0(%arg0: i32) -> (i32, i32) {
    %c0_i32 = arith.constant 0 : i32
    %c0_i32_0 = arith.constant 0 : i32
    return %arg0, %c0_i32 : i32, i32
  }
  func.func @transform_1(%arg0: i32) -> (i32, i32) {
    %c0_i32 = arith.constant 0 : i32
    %c0_i32_0 = arith.constant 0 : i32
    %c0_i32_1 = arith.constant 0 : i32
    return %c0_i32, %c0_i32_0 : i32, i32
  }
  func.func @transform_2(%arg0: i32) -> (i32, i32) {
    %c0_i32 = arith.constant 0 : i32
    %c0_i32_0 = arith.constant 0 : i32
    return %arg0, %c0_i32 : i32, i32
  }
}

</mosaic_0001>

<bundles_post_ra>
// kernel: tpu_custom_call.1
= control target key start
LH: loop header
LB: loop body
LE: loop exit
PB: predicated region body
PF: predicated region fallthrough
CT: control target
= control target key end

     0   :  { %7 = vsyncpa [#allocation3], 0  ;;  %s2015_s0 = inlined_call_operand.hbm [shape: bf16[256,128], index: 0, kind: input, shape index: {}]   ;;  %s2016_s1 = inlined_call_operand.hbm [shape: bf16[128,128], index: 1, kind: input, shape index: {}]   ;;  %s2017_s2 = inlined_call_operand.vmem [shape: s32[256,1], index: 2, kind: output, shape index: {}]  }
   0x1   :  { %8 = vsyncpa [#allocation5], 0  ;;  %s1233_s9 = smov [#allocation2]   ;;  %s1185_s13 = scalar_lea.hbm %s2015_s0, 2048 }
   0x2   :  { %s14_s10 = sshll.u32 %s1233_s9, 4  ;;  %p1186_p0 = scmp.ne.s32.totalorder %s2015_s0, %s1185_s13  ;;  %s15_s10 = int_to_ptr.vmem [resolvable:$true] %s14_s10 }
   0x3   :  { %p1189_p1 = scmp.lt.u32.totalorder %s1185_s13, %s2015_s0 }
   0x5   :  { %p1191_p2 = pnand %p1189_p1, %p1186_p0 }
   0x7   :  { %1194 = shalt.err (!%p1191_p2)
}
   0x8   :  { %s1195_s18 = scalar_lea.vmem %s15_s10, 2048  ;;  %p1200_p4 = scmp.lt.s32.totalorder %s15_s10, %s15_s10 }
   0x9   :  { %p1196_p3 = scmp.ne.s32.totalorder %s15_s10, %s1195_s18  ;;  %p1201_p5 = scmp.lt.s32.totalorder %s1195_s18, %s1195_s18 }
   0xb   :  { %p1202_p6 = por %p1201_p5, %p1200_p4 }
   0xd   :  { %p1203_p7 = pnand %p1202_p6, %p1196_p3 }
   0xf   :  { %1206 = shalt.err (!%p1203_p7)
}
  0x10   :  { %s1234_s19 = smov 64   ;;  %s1235_s20 = smov 4  }
  0x11   :  { %20 = dma.hbm_to_vmem [thread:$0]  %s2015_s0, 2048, %s15_s10, [#allocation3], %s1234_s19, %s1234_s19, %s1235_s20  }
  0x12   :  { %s1236_s23 = smov [#allocation4]   ;;  %s1207_s27 = scalar_lea.hbm %s2016_s1, 1024 }
  0x13   :  { %s26_s24 = sshll.u32 %s1236_s23, 4  ;;  %p1208_p8 = scmp.ne.s32.totalorder %s2016_s1, %s1207_s27  ;;  %s27_s24 = int_to_ptr.vmem [resolvable:$true] %s26_s24 }
  0x14   :  { %p1211_p9 = scmp.lt.u32.totalorder %s1207_s27, %s2016_s1 }
  0x16   :  { %p1213_p10 = pnand %p1211_p9, %p1208_p8 }
  0x18   :  { %1216 = shalt.err (!%p1213_p10)
}
  0x19   :  { %s1217_s4 = scalar_lea.vmem %s27_s24, 1024  ;;  %p1222_p12 = scmp.lt.s32.totalorder %s27_s24, %s27_s24 }
  0x1a   :  { %p1218_p11 = scmp.ne.s32.totalorder %s27_s24, %s1217_s4  ;;  %p1223_p13 = scmp.lt.s32.totalorder %s1217_s4, %s1217_s4 }
  0x1c   :  { %p1224_p0 = por %p1223_p13, %p1222_p12 }
  0x1e   :  { %p1225_p1 = pnand %p1224_p0, %p1218_p11 }
  0x20   :  { %1228 = shalt.err (!%p1225_p1)
}
  0x21   :  { %32 = dma.hbm_to_vmem [thread:$0]  %s2016_s1, 1024, %s27_s24, [#allocation5], %s1234_s19, %s1234_s19, %s1235_s20  }
  0x22   :  { %1229 = dma.done.wait [#allocation3], 2048  }
  0x23   :  { %1230 = vsyncadd [#allocation3], 4294965248 }
  0x24   :  { %1231 = dma.done.wait [#allocation5], 1024  }
  0x25   :  { %1232 = vsyncadd [#allocation5], 4294966272  ;;  %v1161_v0 = vld [vmem:[#allocation4] sm:$0xff]   ;;  %v1162_v1 = vld [vmem:[#allocation4 + $0x8] sm:$0xff]   ;;  %v393_v24 = vlaneseq }
  0x26   :  { %1093 = vmatprep.subr.bf16.mxu0 %v1161_v0  ;;  %1141 = vmatprep.subr.bf16.mxu1 %v1161_v0  ;;  %v1163_v2 = vld [vmem:[#allocation4 + $0x10] sm:$0xff]   ;;  %v1164_v3 = vld [vmem:[#allocation4 + $0x18] sm:$0xff]   ;;  %v1169_v4 = vld [vmem:[#allocation2] sm:$0xff]  }
  0x27   :  { %1094 = vmatpush3.bf16.msra.mxu0 %v1161_v0  ;;  %1149 = vmatpush3.bf16.msra.mxu1 %v1161_v0  ;;  %v1170_v5 = vld [vmem:[#allocation2 + $0x40] sm:$0xff]   ;;  %v1166_v7 = vld [vmem:[#allocation4 + $0x28] sm:$0xff]   ;;  %v1167_v8 = vld [vmem:[#allocation4 + $0x30] sm:$0xff]   ;;  %v1276_v25 = vand.u32 127, %v393_v24 }
  0x28   :  { %1095 = vmatprep.subr.bf16.mxu0 %v1162_v1  ;;  %1142 = vmatprep.subr.bf16.mxu1 %v1162_v1  ;;  %v1165_v6 = vld [vmem:[#allocation4 + $0x20] sm:$0xff]   ;;  %v1168_v9 = vld [vmem:[#allocation4 + $0x38] sm:$0xff]   ;;  %v1171_v10 = vld [vmem:[#allocation2 + $0x8] sm:$0xff]  }
  0x29   :  { %1109 = vmatprep.mubr.bf16.mxu0 %v1169_v4  ;;  %1125 = vmatprep.mubr.bf16.mxu1 %v1170_v5  ;;  %v1172_v11 = vld [vmem:[#allocation2 + $0x48] sm:$0xff]   ;;  %v1173_v12 = vld [vmem:[#allocation2 + $0x10] sm:$0xff]   ;;  %v1174_v14 = vld [vmem:[#allocation2 + $0x18] sm:$0xff]   ;;  %vm395_vm0 = vcmp.lt.s32.totalorder %v1276_v25, 36 }
  0x2a   :  { %v1175_v13 = vld [vmem:[#allocation2 + $0x50] sm:$0xff]   ;;  %v1176_v15 = vld [vmem:[#allocation2 + $0x58] sm:$0xff]   ;;  %v1177_v16 = vld [vmem:[#allocation2 + $0x20] sm:$0xff]  }
  0x2b   :  { %1096 = vmatpush3.bf16.msra.mxu0 %v1162_v1  ;;  %1150 = vmatpush3.bf16.msra.mxu1 %v1162_v1  ;;  %v1179_v17 = vld [vmem:[#allocation2 + $0x60] sm:$0xff]   ;;  %v1178_v18 = vld [vmem:[#allocation2 + $0x28] sm:$0xff]   ;;  %v1181_v20 = vld [vmem:[#allocation2 + $0x30] sm:$0xff]  }
  0x2c   :  { %1097 = vmatprep.subr.bf16.mxu0 %v1163_v2  ;;  %1143 = vmatprep.subr.bf16.mxu1 %v1163_v2  ;;  %v1180_v19 = vld [vmem:[#allocation2 + $0x68] sm:$0xff]   ;;  %v1183_v21 = vld [vmem:[#allocation2 + $0x70] sm:$0xff]   ;;  %v1182_v22 = vld [vmem:[#allocation2 + $0x38] sm:$0xff]  }
  0x2d   :  { %v1184_v23 = vld [vmem:[#allocation2 + $0x78] sm:$0xff]  }
  0x2f   :  { %1098 = vmatpush3.bf16.msra.mxu0 %v1163_v2  ;;  %1151 = vmatpush3.bf16.msra.mxu1 %v1163_v2 }
  0x30   :  { %1099 = vmatprep.subr.bf16.mxu0 %v1164_v3  ;;  %1144 = vmatprep.subr.bf16.mxu1 %v1164_v3 }
  0x33   :  { %1100 = vmatpush3.bf16.msra.mxu0 %v1164_v3  ;;  %1152 = vmatpush3.bf16.msra.mxu1 %v1164_v3 }
  0x34   :  { %1101 = vmatprep.subr.bf16.mxu0 %v1165_v6  ;;  %1145 = vmatprep.subr.bf16.mxu1 %v1165_v6 }
  0x37   :  { %1102 = vmatpush3.bf16.msra.mxu0 %v1165_v6  ;;  %1153 = vmatpush3.bf16.msra.mxu1 %v1165_v6 }
  0x38   :  { %1103 = vmatprep.subr.bf16.mxu0 %v1166_v7  ;;  %1146 = vmatprep.subr.bf16.mxu1 %v1166_v7 }
  0x3b   :  { %1104 = vmatpush3.bf16.msra.mxu0 %v1166_v7  ;;  %1154 = vmatpush3.bf16.msra.mxu1 %v1166_v7 }
  0x3c   :  { %1105 = vmatprep.subr.bf16.mxu0 %v1167_v8  ;;  %1147 = vmatprep.subr.bf16.mxu1 %v1167_v8 }
  0x3f   :  { %1106 = vmatpush3.bf16.msra.mxu0 %v1167_v8  ;;  %1155 = vmatpush3.bf16.msra.mxu1 %v1167_v8 }
  0x40   :  { %1107 = vmatprep.subr.bf16.mxu0 %v1168_v9  ;;  %1148 = vmatprep.subr.bf16.mxu1 %v1168_v9 }
  0x43   :  { %1108 = vmatpush3.bf16.msra.mxu0 %v1168_v9  ;;  %1156 = vmatpush3.bf16.msra.mxu1 %v1168_v9 }
  0x46   :  { %1110 = vmatmul.mubr.bf16.vlgmr.msra.gmra.mrb[0].mxu0 %v1171_v10  ;;  %1126 = vmatmul.mubr.bf16.vlgmr.msra.gmra.mrb[0].mxu1 %v1172_v11 }
  0x47   :  { %1113 = vmatprep.mubr.bf16.mxu0 %v1173_v12  ;;  %1129 = vmatprep.mubr.bf16.mxu1 %v1175_v13 }
  0x4e   :  { %1114 = vmatmul.mubr.bf16.gmra.mrb[4].mxu0 %v1174_v14  ;;  %1130 = vmatmul.mubr.bf16.gmra.mrb[4].mxu1 %v1176_v15 }
  0x4f   :  { %1117 = vmatprep.mubr.bf16.mxu0 %v1177_v16  ;;  %1133 = vmatprep.mubr.bf16.mxu1 %v1179_v17 }
  0x56   :  { %1118 = vmatmul.mubr.bf16.gmra.mrb[8].mxu0 %v1178_v18  ;;  %1134 = vmatmul.mubr.bf16.gmra.mrb[8].mxu1 %v1180_v19 }
  0x57   :  { %1121 = vmatprep.mubr.bf16.mxu0 %v1181_v20  ;;  %1137 = vmatprep.mubr.bf16.mxu1 %v1183_v21 }
  0x5e   :  { %1122 = vmatmul.mubr.bf16.gmra.mrb[12].mxu0 %v1182_v22  ;;  %1138 = vmatmul.mubr.bf16.gmra.mrb[12].mxu1 %v1184_v23 }
 0x119   :  { %v1111_v26 = vpop.f32.mrb[0].mxu0  ;;  %v1127_v27 = vpop.f32.mrb[0].mxu1 }
 0x11a   :  { %v266_v28 = vpop.f32.mrb[1].mxu0  ;;  %v330_v29 = vpop.f32.mrb[1].mxu1  ;;  %v1281_v30 = vsel %vm395_vm0, %v1127_v27, -3e+38  ;;  %v1285_v31 = vsel %vm395_vm0, %v1111_v26, -3e+38 }
 0x11b   :  { %466 = vmax.xlane.f32.xlu0 %v1281_v30  ;;  %v1128_v32 = vpop.f32.mrb[2].mxu1  ;;  %434 = vmax.xlane.f32.xlu1 %v1285_v31  ;;  %v1112_v33 = vpop.f32.mrb[2].mxu0  ;;  %v1291_v36 = vsel %vm395_vm0, %v266_v28, -3e+38  ;;  %v1301_v40 = vsel %vm395_vm0, %v330_v29, -3e+38 }
 0x11c   :  { %v269_v34 = vpop.f32.mrb[3].mxu0  ;;  %v333_v35 = vpop.f32.mrb[3].mxu1  ;;  %v1295_v37 = vsel %vm395_vm0, %v1112_v33, -3e+38  ;;  %v1305_v41 = vsel %vm395_vm0, %v1128_v32, -3e+38 }
 0x11d   :  { %v1311_v48 = vsel %vm395_vm0, %v333_v35, -3e+38  ;;  %v1315_v49 = vsel %vm395_vm0, %v269_v34, -3e+38 }
 0x11f   :  { %430 = vmax.xlane.f32.xlu0 %v1291_v36  ;;  %436 = vmax.xlane.f32.xlu1 %v1295_v37 }
 0x121   :  { %v1115_v38 = vpop.f32.mrb[4].mxu0  ;;  %v1131_v39 = vpop.f32.mrb[4].mxu1 }
 0x122   :  { %v282_v42 = vpop.f32.mrb[5].mxu0  ;;  %v346_v43 = vpop.f32.mrb[5].mxu1  ;;  %v1321_v50 = vsel %vm395_vm0, %v1115_v38, -3e+38  ;;  %v1331_v58 = vsel %vm395_vm0, %v1131_v39, -3e+38 }
 0x123   :  { %462 = vmax.xlane.f32.xlu0 %v1301_v40  ;;  %468 = vmax.xlane.f32.xlu1 %v1305_v41  ;;  %v1116_v44 = vpop.f32.mrb[6].mxu0  ;;  %v1132_v45 = vpop.f32.mrb[6].mxu1  ;;  %v1341_v0 = vsel %vm395_vm0, %v282_v42, -3e+38  ;;  %v1351_v8 = vsel %vm395_vm0, %v346_v43, -3e+38 }
 0x124   :  { %v285_v46 = vpop.f32.mrb[7].mxu0  ;;  %v349_v47 = vpop.f32.mrb[7].mxu1  ;;  %v1325_v51 = vsel %vm395_vm0, %v1116_v44, -3e+38  ;;  %v1335_v59 = vsel %vm395_vm0, %v1132_v45, -3e+38 }
 0x125   :  { %v1345_v1 = vsel %vm395_vm0, %v285_v46, -3e+38  ;;  %v1355_v9 = vsel %vm395_vm0, %v349_v47, -3e+38 }
 0x127   :  { %464 = vmax.xlane.f32.xlu1 %v1311_v48  ;;  %432 = vmax.xlane.f32.xlu0 %v1315_v49 }
 0x129   :  { %v1119_v52 = vpop.f32.mrb[8].mxu0  ;;  %v1135_v53 = vpop.f32.mrb[8].mxu1 }
 0x12a   :  { %v298_v54 = vpop.f32.mrb[9].mxu0  ;;  %v362_v55 = vpop.f32.mrb[9].mxu1  ;;  %v1361_v10 = vsel %vm395_vm0, %v1119_v52, -3e+38  ;;  %v1371_v12 = vsel %vm395_vm0, %v1135_v53, -3e+38 }
 0x12b   :  { %442 = vmax.xlane.f32.xlu0 %v1321_v50  ;;  %444 = vmax.xlane.f32.xlu1 %v1325_v51  ;;  %v1120_v56 = vpop.f32.mrb[10].mxu0  ;;  %v1136_v57 = vpop.f32.mrb[10].mxu1  ;;  %v1381_v14 = vsel %vm395_vm0, %v298_v54, -3e+38  ;;  %v1391_v16 = vsel %vm395_vm0, %v362_v55, -3e+38 }
 0x12c   :  { %v301_v60 = vpop.f32.mrb[11].mxu0  ;;  %v365_v61 = vpop.f32.mrb[11].mxu1  ;;  %v1365_v11 = vsel %vm395_vm0, %v1120_v56, -3e+38  ;;  %v1375_v13 = vsel %vm395_vm0, %v1136_v57, -3e+38 }
 0x12d   :  { %v1385_v15 = vsel %vm395_vm0, %v301_v60, -3e+38  ;;  %v1395_v17 = vsel %vm395_vm0, %v365_v61, -3e+38 }
 0x12f   :  { %474 = vmax.xlane.f32.xlu0 %v1331_v58  ;;  %476 = vmax.xlane.f32.xlu1 %v1335_v59 }
 0x131   :  { %v1123_v62 = vpop.f32.mrb[12].mxu0  ;;  %v1139_v63 = vpop.f32.mrb[12].mxu1 }
 0x132   :  { %v314_v2 = vpop.f32.mrb[13].mxu0  ;;  %v378_v3 = vpop.f32.mrb[13].mxu1  ;;  %v1401_v18 = vsel %vm395_vm0, %v1123_v62, -3e+38  ;;  %v1431_v24 = vsel %vm395_vm0, %v1139_v63, -3e+38 }
 0x133   :  { %438 = vmax.xlane.f32.xlu0 %v1341_v0  ;;  %440 = vmax.xlane.f32.xlu1 %v1345_v1  ;;  %v1124_v4 = vpop.f32.mrb[14].mxu0  ;;  %v1140_v5 = vpop.f32.mrb[14].mxu1  ;;  %v1411_v20 = vsel %vm395_vm0, %v314_v2, -3e+38  ;;  %v1421_v22 = vsel %vm395_vm0, %v378_v3, -3e+38 }
 0x134   :  { %v317_v6 = vpop.f32.mrb[15].mxu0  ;;  %v381_v7 = vpop.f32.mrb[15].mxu1  ;;  %v1405_v19 = vsel %vm395_vm0, %v1124_v4, -3e+38  ;;  %v1435_v26 = vsel %vm395_vm0, %v1140_v5, -3e+38 }
 0x135   :  { %v1415_v21 = vsel %vm395_vm0, %v317_v6, -3e+38  ;;  %v1425_v23 = vsel %vm395_vm0, %v381_v7, -3e+38 }
 0x137   :  { %470 = vmax.xlane.f32.xlu0 %v1351_v8  ;;  %472 = vmax.xlane.f32.xlu1 %v1355_v9 }
 0x13b   :  { %450 = vmax.xlane.f32.xlu0 %v1361_v10  ;;  %452 = vmax.xlane.f32.xlu1 %v1365_v11 }
 0x13f   :  { %482 = vmax.xlane.f32.xlu0 %v1371_v12  ;;  %484 = vmax.xlane.f32.xlu1 %v1375_v13 }
 0x143   :  { %446 = vmax.xlane.f32.xlu0 %v1381_v14  ;;  %448 = vmax.xlane.f32.xlu1 %v1385_v15 }
 0x147   :  { %478 = vmax.xlane.f32.xlu0 %v1391_v16  ;;  %480 = vmax.xlane.f32.xlu1 %v1395_v17 }
 0x14b   :  { %458 = vmax.xlane.f32.xlu0 %v1401_v18  ;;  %460 = vmax.xlane.f32.xlu1 %v1405_v19 }
 0x14f   :  { %454 = vmax.xlane.f32.xlu0 %v1411_v20  ;;  %456 = vmax.xlane.f32.xlu1 %v1415_v21 }
 0x153   :  { %486 = vmax.xlane.f32.xlu0 %v1421_v22  ;;  %488 = vmax.xlane.f32.xlu1 %v1425_v23 }
 0x157   :  { %490 = vmax.xlane.f32.xlu0 %v1431_v24  ;;  %492 = vmax.xlane.f32.xlu1 %v1435_v26 }
 0x1a8   :  { %v467_v27 = vpop.xlane.xlu0 %466  ;;  %v435_v28 = vpop.xlane.xlu1 %434 }
 0x1a9   :  { %vm512_vm1 = vcmp.eq.f32.partialorder %v1281_v30, %v467_v27  ;;  %vm496_vm2 = vcmp.eq.f32.partialorder %v1285_v31, %v435_v28 }
 0x1aa   :  { %v1442_v29 = vsel %vm512_vm1, %v1276_v25, 128  ;;  %v1445_v32 = vsel %vm496_vm2, %v1276_v25, 128 }
 0x1ab   :  { %v587_v33 = vshra.s32 %v1445_v32, 16  ;;  %v811_v30 = vshra.s32 %v1442_v29, 16 }
 0x1ac   :  { %v431_v34 = vpop.xlane.xlu0 %430  ;;  %v437_v35 = vpop.xlane.xlu1 %436 }
 0x1ad   :  { %vm494_vm3 = vcmp.eq.f32.partialorder %v1291_v36, %v431_v34  ;;  %vm497_vm4 = vcmp.eq.f32.partialorder %v1295_v37, %v437_v35  ;;  %v1450_v38 = vcvt.s32.f32 %v587_v33  ;;  %v1464_v37 = vcvt.s32.f32 %v811_v30 }
 0x1ae   :  { %v1454_v31 = vsel %vm494_vm3, %v1276_v25, 128  ;;  %v1457_v39 = vsel %vm497_vm4, %v1276_v25, 128 }
 0x1af   :  { %590 = vmin.xlane.f32.xlu0 %v1450_v38  ;;  %v601_v42 = vshra.s32 %v1457_v39, 16  ;;  %v559_v36 = vshra.s32 %v1454_v31, 16 }
 0x1b0   :  { %v463_v43 = vpop.xlane.xlu0 %462  ;;  %v469_v44 = vpop.xlane.xlu1 %468 }
 0x1b1   :  { %vm510_vm5 = vcmp.eq.f32.partialorder %v1301_v40, %v463_v43  ;;  %vm513_vm6 = vcmp.eq.f32.partialorder %v1305_v41, %v469_v44  ;;  %v1466_v45 = vcvt.s32.f32 %v601_v42  ;;  %v1477_v54 = vcvt.s32.f32 %v559_v36 }
 0x1b2   :  { %v1469_v46 = vsel %vm510_vm5, %v1276_v25, 128  ;;  %v1472_v47 = vsel %vm513_vm6, %v1276_v25, 128 }
 0x1b3   :  { %814 = vmin.xlane.f32.xlu0 %v1464_v37  ;;  %604 = vmin.xlane.f32.xlu1 %v1466_v45  ;;  %v825_v52 = vshra.s32 %v1472_v47, 16  ;;  %v783_v55 = vshra.s32 %v1469_v46, 16 }
 0x1b4   :  { %v465_v53 = vpop.xlane.xlu1 %464  ;;  %v433_v40 = vpop.xlane.xlu0 %432 }
 0x1b5   :  { %vm511_vm7 = vcmp.eq.f32.partialorder %v1311_v48, %v465_v53  ;;  %vm495_vm8 = vcmp.eq.f32.partialorder %v1315_v49, %v433_v40  ;;  %v1481_v41 = vcvt.s32.f32 %v825_v52  ;;  %v1496_v62 = vcvt.s32.f32 %v783_v55 }
 0x1b6   :  { %v1485_v56 = vsel %vm511_vm7, %v1276_v25, 128  ;;  %v1488_v57 = vsel %vm495_vm8, %v1276_v25, 128 }
 0x1b7   :  { %562 = vmin.xlane.f32.xlu0 %v1477_v54  ;;  %828 = vmin.xlane.f32.xlu1 %v1481_v41  ;;  %v573_v60 = vshra.s32 %v1488_v57, 16  ;;  %v797_v49 = vshra.s32 %v1485_v56, 16 }
 0x1b8   :  { %v443_v61 = vpop.xlane.xlu0 %442  ;;  %v445_v48 = vpop.xlane.xlu1 %444 }
 0x1b9   :  { %vm500_vm9 = vcmp.eq.f32.partialorder %v1321_v50, %v443_v61  ;;  %vm501_vm10 = vcmp.eq.f32.partialorder %v1325_v51, %v445_v48  ;;  %v1498_v63 = vcvt.s32.f32 %v573_v60  ;;  %v1509_v6 = vcvt.s32.f32 %v797_v49 }
 0x1ba   :  { %v1501_v2 = vsel %vm500_vm9, %v1276_v25, 128  ;;  %v1504_v3 = vsel %vm501_vm10, %v1276_v25, 128 }
 0x1bb   :  { %786 = vmin.xlane.f32.xlu0 %v1496_v62  ;;  %576 = vmin.xlane.f32.xlu1 %v1498_v63  ;;  %v643_v4 = vshra.s32 %v1501_v2, 16  ;;  %v657_v7 = vshra.s32 %v1504_v3, 16 }
 0x1bc   :  { %v475_v5 = vpop.xlane.xlu0 %474  ;;  %v477_v50 = vpop.xlane.xlu1 %476 }
 0x1bd   :  { %vm516_vm11 = vcmp.eq.f32.partialorder %v1331_v58, %v475_v5  ;;  %vm517_vm12 = vcmp.eq.f32.partialorder %v1335_v59, %v477_v50  ;;  %v1513_v51 = vcvt.s32.f32 %v643_v4  ;;  %v1530_v30 = vcvt.s32.f32 %v657_v7 }
 0x1be   :  { %v1517_v27 = vsel %vm516_vm11, %v1276_v25, 128  ;;  %v1520_v28 = vsel %vm517_vm12, %v1276_v25, 128 }
 0x1bf   :  { %646 = vmin.xlane.f32.xlu0 %v1513_v51  ;;  %800 = vmin.xlane.f32.xlu1 %v1509_v6  ;;  %v867_v33 = vshra.s32 %v1517_v27, 16  ;;  %v881_v59 = vshra.s32 %v1520_v28, 16 }
 0x1c0   :  { %v439_v34 = vpop.xlane.xlu0 %438  ;;  %v441_v58 = vpop.xlane.xlu1 %440 }
 0x1c1   :  { %vm498_vm13 = vcmp.eq.f32.partialorder %v1341_v0, %v439_v34  ;;  %vm499_vm14 = vcmp.eq.f32.partialorder %v1345_v1, %v441_v58  ;;  %v1528_v35 = vcvt.s32.f32 %v867_v33  ;;  %v1541_v52 = vcvt.s32.f32 %v881_v59 }
 0x1c2   :  { %v1533_v42 = vsel %vm498_vm13, %v1276_v25, 128  ;;  %v1536_v43 = vsel %vm499_vm14, %v1276_v25, 128 }
 0x1c3   :  { %870 = vmin.xlane.f32.xlu0 %v1528_v35  ;;  %660 = vmin.xlane.f32.xlu1 %v1530_v30  ;;  %v615_v44 = vshra.s32 %v1533_v42, 16  ;;  %v629_v53 = vshra.s32 %v1536_v43, 16 }
 0x1c4   :  { %v471_v36 = vpop.xlane.xlu0 %470  ;;  %v473_v0 = vpop.xlane.xlu1 %472 }
 0x1c5   :  { %vm514_vm15 = vcmp.eq.f32.partialorder %v1351_v8, %v471_v36  ;;  %vm515_vm0 = vcmp.eq.f32.partialorder %v1355_v9, %v473_v0  ;;  %v1545_v1 = vcvt.s32.f32 %v615_v44  ;;  %v1562_v49 = vcvt.s32.f32 %v629_v53 }
 0x1c6   :  { %v1549_v40 = vsel %vm514_vm15, %v1276_v25, 128  ;;  %v1552_v55 = vsel %vm515_vm0, %v1276_v25, 128 }
 0x1c7   :  { %618 = vmin.xlane.f32.xlu0 %v1545_v1  ;;  %884 = vmin.xlane.f32.xlu1 %v1541_v52  ;;  %v839_v60 = vshra.s32 %v1549_v40, 16  ;;  %v853_v9 = vshra.s32 %v1552_v55, 16 }
 0x1c8   :  { %v451_v61 = vpop.xlane.xlu0 %450  ;;  %v453_v8 = vpop.xlane.xlu1 %452 }
 0x1c9   :  { %vm504_vm1 = vcmp.eq.f32.partialorder %v1361_v10, %v451_v61  ;;  %vm505_vm2 = vcmp.eq.f32.partialorder %v1365_v11, %v453_v8  ;;  %v1560_v48 = vcvt.s32.f32 %v839_v60  ;;  %v1573_v33 = vcvt.s32.f32 %v853_v9 }
 0x1ca   :  { %v1565_v4 = vsel %vm504_vm1, %v1276_v25, 128  ;;  %v1568_v5 = vsel %vm505_vm2, %v1276_v25, 128 }
 0x1cb   :  { %842 = vmin.xlane.f32.xlu0 %v1560_v48  ;;  %632 = vmin.xlane.f32.xlu1 %v1562_v49  ;;  %v699_v50 = vshra.s32 %v1565_v4, 16  ;;  %v713_v34 = vshra.s32 %v1568_v5, 16 }
 0x1cc   :  { %v483_v7 = vpop.xlane.xlu0 %482  ;;  %v485_v10 = vpop.xlane.xlu1 %484 }
 0x1cd   :  { %vm520_vm3 = vcmp.eq.f32.partialorder %v1371_v12, %v483_v7  ;;  %vm521_vm4 = vcmp.eq.f32.partialorder %v1375_v13, %v485_v10  ;;  %v1577_v11 = vcvt.s32.f32 %v699_v50  ;;  %v1594_v53 = vcvt.s32.f32 %v713_v34 }
 0x1ce   :  { %v1581_v58 = vsel %vm520_vm3, %v1276_v25, 128  ;;  %v1584_v59 = vsel %vm521_vm4, %v1276_v25, 128 }
 0x1cf   :  { %702 = vmin.xlane.f32.xlu0 %v1577_v11  ;;  %856 = vmin.xlane.f32.xlu1 %v1573_v33  ;;  %v923_v44 = vshra.s32 %v1581_v58, 16  ;;  %v937_v13 = vshra.s32 %v1584_v59, 16 }
 0x1d0   :  { %v447_v36 = vpop.xlane.xlu0 %446  ;;  %v449_v12 = vpop.xlane.xlu1 %448 }
 0x1d1   :  { %vm502_vm5 = vcmp.eq.f32.partialorder %v1381_v14, %v447_v36  ;;  %vm503_vm6 = vcmp.eq.f32.partialorder %v1385_v15, %v449_v12  ;;  %v1592_v0 = vcvt.s32.f32 %v923_v44  ;;  %v1605_v50 = vcvt.s32.f32 %v937_v13 }
 0x1d2   :  { %v1597_v60 = vsel %vm502_vm5, %v1276_v25, 128  ;;  %v1600_v61 = vsel %vm503_vm6, %v1276_v25, 128 }
 0x1d3   :  { %926 = vmin.xlane.f32.xlu0 %v1592_v0  ;;  %716 = vmin.xlane.f32.xlu1 %v1594_v53  ;;  %v671_v8 = vshra.s32 %v1597_v60, 16  ;;  %v685_v7 = vshra.s32 %v1600_v61, 16 }
 0x1d4   :  { %v479_v9 = vpop.xlane.xlu0 %478  ;;  %v481_v14 = vpop.xlane.xlu1 %480 }
 0x1d5   :  { %vm518_vm7 = vcmp.eq.f32.partialorder %v1391_v16, %v479_v9  ;;  %vm519_vm8 = vcmp.eq.f32.partialorder %v1395_v17, %v481_v14  ;;  %v1609_v15 = vcvt.s32.f32 %v671_v8  ;;  %v1626_v13 = vcvt.s32.f32 %v685_v7 }
 0x1d6   :  { %v1613_v10 = vsel %vm518_vm7, %v1276_v25, 128  ;;  %v1616_v34 = vsel %vm519_vm8, %v1276_v25, 128 }
 0x1d7   :  { %2028 = vst [vmem:[#allocation8_spill] sm:$0xff] %v1616_v34  ;;  %674 = vmin.xlane.f32.xlu0 %v1609_v15  ;;  %940 = vmin.xlane.f32.xlu1 %v1605_v50  ;;  %v895_v44 = vshra.s32 %v1613_v10, 16  ;;  %v909_v17 = vshra.s32 %v1616_v34, 16  ;;  %2029 = vst [vmem:[#allocation9_spill] sm:$0xff] %v1626_v13 }
 0x1d8   :  { %v459_v36 = vpop.xlane.xlu0 %458  ;;  %v461_v16 = vpop.xlane.xlu1 %460 }
 0x1d9   :  { %vm508_vm9 = vcmp.eq.f32.partialorder %v1401_v18, %v459_v36  ;;  %vm509_vm10 = vcmp.eq.f32.partialorder %v1405_v19, %v461_v16  ;;  %v1624_v12 = vcvt.s32.f32 %v895_v44  ;;  %v1637_v36 = vcvt.s32.f32 %v909_v17 }
 0x1da   :  { %v1629_v8 = vsel %vm508_vm9, %v1276_v25, 128  ;;  %v1632_v9 = vsel %vm509_vm10, %v1276_v25, 128 }
 0x1db   :  { %898 = vmin.xlane.f32.xlu0 %v1624_v12  ;;  %688 = vmin.xlane.f32.xlu1 %v1626_v13  ;;  %v755_v14 = vshra.s32 %v1629_v8, 16  ;;  %2030 = vst [vmem:[#allocation10_spill] sm:$0xff] %v1637_v36  ;;  %v769_v7 = vshra.s32 %v1632_v9, 16 }
 0x1dc   :  { %v455_v34 = vpop.xlane.xlu0 %454  ;;  %v457_v18 = vpop.xlane.xlu1 %456 }
 0x1dd   :  { %vm506_vm11 = vcmp.eq.f32.partialorder %v1411_v20, %v455_v34  ;;  %vm507_vm12 = vcmp.eq.f32.partialorder %v1415_v21, %v457_v18  ;;  %v1641_v19 = vcvt.s32.f32 %v755_v14  ;;  %v1658_v14 = vcvt.s32.f32 %v769_v7 }
 0x1de   :  { %v1645_v44 = vsel %vm506_vm11, %v1276_v25, 128  ;;  %v1648_v16 = vsel %vm507_vm12, %v1276_v25, 128 }
 0x1df   :  { %2031 = vst [vmem:[#allocation11_spill] sm:$0xff] %v1641_v19  ;;  %2032 = vst [vmem:[#allocation12_spill] sm:$0xff] %v1648_v16  ;;  %758 = vmin.xlane.f32.xlu0 %v1641_v19  ;;  %912 = vmin.xlane.f32.xlu1 %v1637_v36  ;;  %v727_v17 = vshra.s32 %v1645_v44, 16  ;;  %v741_v21 = vshra.s32 %v1648_v16, 16 }
 0x1e0   :  { %v487_v13 = vpop.xlane.xlu0 %486  ;;  %v489_v20 = vpop.xlane.xlu1 %488  ;;  %2033 = vst [vmem:[#allocation13_spill] sm:$0xff] %v1658_v14 }
 0x1e1   :  { %vm522_vm13 = vcmp.eq.f32.partialorder %v1421_v22, %v487_v13  ;;  %vm523_vm14 = vcmp.eq.f32.partialorder %v1425_v23, %v489_v20  ;;  %v1656_v34 = vcvt.s32.f32 %v727_v17  ;;  %v1669_v13 = vcvt.s32.f32 %v741_v21 }
 0x1e2   :  { %v1661_v18 = vsel %vm522_vm13, %v1276_v25, 128  ;;  %v1664_v19 = vsel %vm523_vm14, %v1276_v25, 128 }
 0x1e3   :  { %730 = vmin.xlane.f32.xlu0 %v1656_v34  ;;  %772 = vmin.xlane.f32.xlu1 %v1658_v14  ;;  %v951_v16 = vshra.s32 %v1661_v18, 16  ;;  %v965_v7 = vshra.s32 %v1664_v19, 16 }
 0x1e4   :  { %v491_v36 = vpop.xlane.xlu0 %490  ;;  %v493_v22 = vpop.xlane.xlu1 %492 }
 0x1e5   :  { %vm524_vm15 = vcmp.eq.f32.partialorder %v1431_v24, %v491_v36  ;;  %vm525_vm0 = vcmp.eq.f32.partialorder %v1435_v26, %v493_v22  ;;  %v1673_v23 = vcvt.s32.f32 %v951_v16  ;;  %v1687_v24 = vcvt.s32.f32 %v965_v7 }
 0x1e6   :  { %v1677_v17 = vsel %vm524_vm15, %v1276_v25, 128  ;;  %v1680_v20 = vsel %vm525_vm0, %v1276_v25, 128  ;;  %v586_v25 = vand.u32 65535, %v1445_v32  ;;  %v810_v16 = vand.u32 65535, %v1442_v29 }
 0x1e7   :  { %2034 = vst [vmem:[#allocation14_spill] sm:$0xff] %v1680_v20  ;;  %954 = vmin.xlane.f32.xlu0 %v1673_v23  ;;  %744 = vmin.xlane.f32.xlu1 %v1669_v13  ;;  %v979_v21 = vshra.s32 %v1677_v17, 16  ;;  %2036 = vst [vmem:[#allocation16_spill] sm:$0xff] %v1687_v24  ;;  %v993_v26 = vshra.s32 %v1680_v20, 16  ;;  %v600_v22 = vand.u32 65535, %v1457_v39 }
 0x1e8   :  { %v588_v7 = vcvt.s32.f32 %v586_v25  ;;  %v812_v32 = vcvt.s32.f32 %v810_v16 }
 0x1e9   :  { %v1685_v14 = vcvt.s32.f32 %v979_v21  ;;  %v1692_v36 = vcvt.s32.f32 %v993_v26  ;;  %v824_v26 = vand.u32 65535, %v1472_v47  ;;  %v602_v29 = vcvt.s32.f32 %v600_v22 }
 0x1ea   :  { %v572_v47 = vand.u32 65535, %v1488_v57  ;;  %v642_v57 = vand.u32 65535, %v1501_v2  ;;  %v866_v2 = vand.u32 65535, %v1517_v27  ;;  %v614_v27 = vand.u32 65535, %v1533_v42 }
 0x1eb   :  { %2035 = vst [vmem:[#allocation15_spill] sm:$0xff] %v1685_v14  ;;  %982 = vmin.xlane.f32.xlu0 %v1685_v14  ;;  %968 = vmin.xlane.f32.xlu1 %v1687_v24  ;;  %2037 = vst [vmem:[#allocation17_spill] sm:$0xff] %v1692_v36  ;;  %v558_v24 = vand.u32 65535, %v1454_v31  ;;  %v782_v31 = vand.u32 65535, %v1469_v46  ;;  %v826_v22 = vcvt.s32.f32 %v824_v26  ;;  %v796_v46 = vand.u32 65535, %v1485_v56 }
 0x1ec   :  { %v574_v26 = vcvt.s32.f32 %v572_v47  ;;  %v656_v56 = vand.u32 65535, %v1504_v3  ;;  %v880_v3 = vand.u32 65535, %v1520_v28  ;;  %v628_v28 = vand.u32 65535, %v1536_v43 }
 0x1ed   :  { %v560_v16 = vcvt.s32.f32 %v558_v24  ;;  %v784_v24 = vcvt.s32.f32 %v782_v31  ;;  %v798_v31 = vcvt.s32.f32 %v796_v46  ;;  %v838_v42 = vand.u32 65535, %v1549_v40 }
 0x1ee   :  { %v852_v43 = vand.u32 65535, %v1552_v55  ;;  %v698_v40 = vand.u32 65535, %v1565_v4  ;;  %v712_v55 = vand.u32 65535, %v1568_v5  ;;  %v922_v4 = vand.u32 65535, %v1581_v58 }
 0x1ef   :  { %996 = vmin.xlane.f32.xlu1 %v1692_v36  ;;  %v936_v5 = vand.u32 65535, %v1584_v59  ;;  %v670_v58 = vand.u32 65535, %v1597_v60  ;;  %v684_v59 = vand.u32 65535, %v1600_v61  ;;  %v894_v60 = vand.u32 65535, %v1613_v10 }
 0x1f0   :  { %v754_v10 = vand.u32 65535, %v1629_v8  ;;  %v726_v8 = vand.u32 65535, %v1645_v44  ;;  %v950_v44 = vand.u32 65535, %v1661_v18  ;;  %v978_v18 = vand.u32 65535, %v1677_v17 }
 0x23c   :  { %v1698_v21 = vpop.xlane.xlu0 %590 }
 0x23d   :  { %vm592_vm1 = vcmp.eq.f32.partialorder %v1450_v38, %v1698_v21 }
 0x23e   :  { %v593_v20 = vsel %vm592_vm1, %v588_v7, inf }
 0x23f   :  { %594 = vmin.xlane.f32.xlu0 %v593_v20 }
 0x240   :  { %v1704_v14 = vpop.xlane.xlu0 %814  ;;  %v1706_v36 = vpop.xlane.xlu1 %604 }
 0x241   :  { %vm816_vm2 = vcmp.eq.f32.partialorder %v1464_v37, %v1704_v14  ;;  %vm606_vm3 = vcmp.eq.f32.partialorder %v1466_v45, %v1706_v36 }
 0x242   :  { %v817_v39 = vsel %vm816_vm2, %v812_v32, inf  ;;  %v607_v38 = vsel %vm606_vm3, %v602_v29, inf }
 0x243   :  { %818 = vmin.xlane.f32.xlu0 %v817_v39  ;;  %608 = vmin.xlane.f32.xlu1 %v607_v38  ;;  %v644_v38 = vcvt.s32.f32 %v642_v57  ;;  %v616_v57 = vcvt.s32.f32 %v614_v27  ;;  %v924_v27 = vcvt.s32.f32 %v922_v4 }
 0x244   :  { %v1714_v20 = vpop.xlane.xlu0 %562  ;;  %v1716_v25 = vpop.xlane.xlu1 %828 }
 0x245   :  { %vm564_vm4 = vcmp.eq.f32.partialorder %v1477_v54, %v1714_v20  ;;  %vm830_vm5 = vcmp.eq.f32.partialorder %v1481_v41, %v1716_v25 }
 0x246   :  { %v565_v37 = vsel %vm564_vm4, %v560_v16, inf  ;;  %v831_v45 = vsel %vm830_vm5, %v826_v22, inf  ;;  %v868_v22 = vcvt.s32.f32 %v866_v2 }
 0x247   :  { %566 = vmin.xlane.f32.xlu0 %v565_v37  ;;  %832 = vmin.xlane.f32.xlu1 %v831_v45  ;;  %v658_v37 = vcvt.s32.f32 %v656_v56  ;;  %v630_v56 = vcvt.s32.f32 %v628_v28  ;;  %v938_v28 = vcvt.s32.f32 %v936_v5  ;;  %v728_v5 = vcvt.s32.f32 %v726_v8 }
 0x248   :  { %v1724_v7 = vpop.xlane.xlu0 %786  ;;  %v1726_v32 = vpop.xlane.xlu1 %576  ;;  %v597_v8 = vcvt.f32.s32 %v1698_v21 }
 0x249   :  { %vm788_vm6 = vcmp.eq.f32.partialorder %v1496_v62, %v1724_v7  ;;  %vm578_vm7 = vcmp.eq.f32.partialorder %v1498_v63, %v1726_v32 }
 0x24a   :  { %v789_v54 = vsel %vm788_vm6, %v784_v24, inf  ;;  %v579_v41 = vsel %vm578_vm7, %v574_v26, inf  ;;  %v882_v24 = vcvt.s32.f32 %v880_v3 }
 0x24b   :  { %790 = vmin.xlane.f32.xlu0 %v789_v54  ;;  %580 = vmin.xlane.f32.xlu1 %v579_v41  ;;  %v840_v41 = vcvt.s32.f32 %v838_v42  ;;  %v2038_v42 = vld [vmem:[#allocation8_spill] sm:$0xff] }
 0x24c   :  { %v1734_v29 = vpop.xlane.xlu0 %646  ;;  %v1736_v39 = vpop.xlane.xlu1 %800  ;;  %v908_v61 = vand.u32 65535, %v2038_v42 }
 0x24d   :  { %vm648_vm8 = vcmp.eq.f32.partialorder %v1513_v51, %v1734_v29  ;;  %vm802_vm9 = vcmp.eq.f32.partialorder %v1509_v6, %v1736_v39 }
 0x24e   :  { %v649_v62 = vsel %vm648_vm8, %v644_v38, inf  ;;  %v803_v63 = vsel %vm802_vm9, %v798_v31, inf  ;;  %v700_v31 = vcvt.s32.f32 %v698_v40  ;;  %v768_v40 = vand.u32 65535, %v1632_v9 }
 0x24f   :  { %650 = vmin.xlane.f32.xlu0 %v649_v62  ;;  %804 = vmin.xlane.f32.xlu1 %v803_v63  ;;  %v854_v62 = vcvt.s32.f32 %v852_v43 }
 0x250   :  { %v1744_v47 = vpop.xlane.xlu0 %870  ;;  %v1746_v16 = vpop.xlane.xlu1 %660 }
 0x251   :  { %vm872_vm10 = vcmp.eq.f32.partialorder %v1528_v35, %v1744_v47  ;;  %vm662_vm11 = vcmp.eq.f32.partialorder %v1530_v30, %v1746_v16 }
 0x252   :  { %v873_v6 = vsel %vm872_vm10, %v868_v22, inf  ;;  %v663_v51 = vsel %vm662_vm11, %v658_v37, inf  ;;  %v714_v22 = vcvt.s32.f32 %v712_v55  ;;  %v2040_v55 = vld [vmem:[#allocation11_spill] sm:$0xff] }
 0x253   :  { %874 = vmin.xlane.f32.xlu0 %v873_v6  ;;  %664 = vmin.xlane.f32.xlu1 %v663_v51  ;;  %v672_v51 = vcvt.s32.f32 %v670_v58  ;;  %v770_v58 = vcvt.s32.f32 %v768_v40 }
 0x254   :  { %v1754_v45 = vpop.xlane.xlu0 %618  ;;  %v1756_v46 = vpop.xlane.xlu1 %884 }
 0x255   :  { %vm620_vm12 = vcmp.eq.f32.partialorder %v1545_v1, %v1754_v45  ;;  %vm886_vm13 = vcmp.eq.f32.partialorder %v1541_v52, %v1756_v46 }
 0x256   :  { %v621_v35 = vsel %vm620_vm12, %v616_v57, inf  ;;  %v887_v30 = vsel %vm886_vm13, %v882_v24, inf }
 0x257   :  { %622 = vmin.xlane.f32.xlu0 %v621_v35  ;;  %888 = vmin.xlane.f32.xlu1 %v887_v30  ;;  %v896_v35 = vcvt.s32.f32 %v894_v60  ;;  %v686_v30 = vcvt.s32.f32 %v684_v59 }
 0x258   :  { %v1764_v26 = vpop.xlane.xlu0 %842  ;;  %v1766_v54 = vpop.xlane.xlu1 %632 }
 0x259   :  { %vm844_vm14 = vcmp.eq.f32.partialorder %v1560_v48, %v1764_v26  ;;  %vm634_vm15 = vcmp.eq.f32.partialorder %v1562_v49, %v1766_v54 }
 0x25a   :  { %v845_v52 = vsel %vm844_vm14, %v840_v41, inf  ;;  %v635_v1 = vsel %vm634_vm15, %v630_v56, inf }
 0x25b   :  { %846 = vmin.xlane.f32.xlu0 %v845_v52  ;;  %636 = vmin.xlane.f32.xlu1 %v635_v1  ;;  %v756_v52 = vcvt.s32.f32 %v754_v10  ;;  %v910_v1 = vcvt.s32.f32 %v908_v61  ;;  %v980_v61 = vcvt.s32.f32 %v978_v18 }
 0x25c   :  { %v1774_v2 = vpop.xlane.xlu0 %702  ;;  %v1776_v38 = vpop.xlane.xlu1 %856 }
 0x25d   :  { %vm704_vm0 = vcmp.eq.f32.partialorder %v1577_v11, %v1774_v2  ;;  %vm858_vm1 = vcmp.eq.f32.partialorder %v1573_v33, %v1776_v38 }
 0x25e   :  { %v705_v48 = vsel %vm704_vm0, %v700_v31, inf  ;;  %v859_v49 = vsel %vm858_vm1, %v854_v62, inf  ;;  %v2042_v62 = vld [vmem:[#allocation12_spill] sm:$0xff]  ;;  %vm1006_vm1 = vcmask 7168  }
 0x25f   :  { %706 = vmin.xlane.f32.xlu0 %v705_v48  ;;  %860 = vmin.xlane.f32.xlu1 %v859_v49  ;;  %v740_v9 = vand.u32 65535, %v2042_v62 }
 0x260   :  { %v1784_v63 = vpop.xlane.xlu0 %926  ;;  %v1786_v3 = vpop.xlane.xlu1 %716 }
 0x261   :  { %vm928_vm2 = vcmp.eq.f32.partialorder %v1592_v0, %v1784_v63  ;;  %vm718_vm3 = vcmp.eq.f32.partialorder %v1594_v53, %v1786_v3 }
 0x262   :  { %v929_v33 = vsel %vm928_vm2, %v924_v27, inf  ;;  %v719_v11 = vsel %vm718_vm3, %v714_v22, inf  ;;  %v2043_v27 = vld [vmem:[#allocation13_spill] sm:$0xff] }
 0x263   :  { %930 = vmin.xlane.f32.xlu0 %v929_v33  ;;  %720 = vmin.xlane.f32.xlu1 %v719_v11  ;;  %v964_v11 = vand.u32 65535, %v1664_v19 }
 0x264   :  { %v1794_v37 = vpop.xlane.xlu0 %674  ;;  %v1796_v6 = vpop.xlane.xlu1 %940 }
 0x265   :  { %vm676_vm4 = vcmp.eq.f32.partialorder %v1609_v15, %v1794_v37  ;;  %vm942_vm5 = vcmp.eq.f32.partialorder %v1605_v50, %v1796_v6  ;;  %v2039_v15 = vld [vmem:[#allocation9_spill] sm:$0xff]  ;;  %v966_v10 = vcvt.s32.f32 %v964_v11  ;;  %v793_v11 = vcvt.f32.s32 %v1724_v7 }
 0x266   :  { %v677_v0 = vsel %vm676_vm4, %v672_v51, inf  ;;  %v943_v53 = vsel %vm942_vm5, %v938_v28, inf  ;;  %v952_v51 = vcvt.s32.f32 %v950_v44  ;;  %v742_v28 = vcvt.s32.f32 %v740_v9 }
 0x267   :  { %678 = vmin.xlane.f32.xlu0 %v677_v0  ;;  %944 = vmin.xlane.f32.xlu1 %v943_v53  ;;  %v2044_v53 = vld [vmem:[#allocation14_spill] sm:$0xff]  ;;  %v569_v9 = vcvt.f32.s32 %v1714_v20  ;;  %v794_v7 = vshll.u32 %v793_v11, 16 }
 0x268   :  { %v1804_v57 = vpop.xlane.xlu0 %898  ;;  %v1806_v24 = vpop.xlane.xlu1 %688  ;;  %v992_v19 = vand.u32 65535, %v2044_v53 }
 0x269   :  { %vm900_vm6 = vcmp.eq.f32.partialorder %v1624_v12, %v1804_v57  ;;  %vm690_vm7 = vcmp.eq.f32.partialorder %v2039_v15, %v1806_v24  ;;  %v2041_v12 = vld [vmem:[#allocation10_spill] sm:$0xff] }
 0x26a   :  { %v901_v50 = vsel %vm900_vm6, %v896_v35, inf  ;;  %v691_v43 = vsel %vm690_vm7, %v686_v30, inf  ;;  %v2045_v35 = vld [vmem:[#allocation15_spill] sm:$0xff] }
 0x26b   :  { %902 = vmin.xlane.f32.xlu0 %v901_v50  ;;  %692 = vmin.xlane.f32.xlu1 %v691_v43  ;;  %v994_v50 = vcvt.s32.f32 %v992_v19  ;;  %v2047_v43 = vld [vmem:[#allocation17_spill] sm:$0xff]  ;;  %v653_v19 = vcvt.f32.s32 %v1734_v29 }
 0x26c   :  { %v1814_v41 = vpop.xlane.xlu0 %758  ;;  %v1816_v56 = vpop.xlane.xlu1 %912 }
 0x26d   :  { %vm760_vm8 = vcmp.eq.f32.partialorder %v2040_v55, %v1814_v41  ;;  %vm914_vm9 = vcmp.eq.f32.partialorder %v2041_v12, %v1816_v56  ;;  %v598_v55 = vshll.u32 %v597_v8, 16  ;;  %v611_v12 = vcvt.f32.s32 %v1706_v36 }
 0x26e   :  { %v761_v4 = vsel %vm760_vm8, %v756_v52, inf  ;;  %v915_v31 = vsel %vm914_vm9, %v910_v1, inf  ;;  %v821_v52 = vcvt.f32.s32 %v1704_v14  ;;  %v654_v29 = vshll.u32 %v653_v19, 16 }
 0x26f   :  { %762 = vmin.xlane.f32.xlu0 %v761_v4  ;;  %916 = vmin.xlane.f32.xlu1 %v915_v31 }
 0x270   :  { %v1824_v48 = vpop.xlane.xlu0 %730  ;;  %v1826_v49 = vpop.xlane.xlu1 %772  ;;  %v822_v62 = vshll.u32 %v821_v52, 16  ;;  %v667_v52 = vcvt.f32.s32 %v1746_v16 }
 0x271   :  { %vm732_vm10 = vcmp.eq.f32.partialorder %v1656_v34, %v1824_v48  ;;  %vm774_vm11 = vcmp.eq.f32.partialorder %v2043_v27, %v1826_v49  ;;  %v835_v27 = vcvt.f32.s32 %v1716_v25 }
 0x272   :  { %v733_v22 = vsel %vm732_vm10, %v728_v5, inf  ;;  %v775_v33 = vsel %vm774_vm11, %v770_v58, inf  ;;  %v612_v58 = vshll.u32 %v611_v12, 16  ;;  %v668_v16 = vshll.u32 %v667_v52, 16 }
 0x273   :  { %734 = vmin.xlane.f32.xlu0 %v733_v22  ;;  %776 = vmin.xlane.f32.xlu1 %v775_v33  ;;  %v570_v33 = vshll.u32 %v569_v9, 16  ;;  %v836_v20 = vshll.u32 %v835_v27, 16 }
 0x274   :  { %v1834_v59 = vpop.xlane.xlu0 %954  ;;  %v1836_v60 = vpop.xlane.xlu1 %744 }
 0x275   :  { %vm956_vm12 = vcmp.eq.f32.partialorder %v1673_v23, %v1834_v59  ;;  %vm746_vm13 = vcmp.eq.f32.partialorder %v1669_v13, %v1836_v60  ;;  %v2046_v23 = vld [vmem:[#allocation16_spill] sm:$0xff] }
 0x276   :  { %v957_v34 = vsel %vm956_vm12, %v952_v51, inf  ;;  %v747_v0 = vsel %vm746_vm13, %v742_v28, inf  ;;  %v583_v28 = vcvt.f32.s32 %v1726_v32 }
 0x277   :  { %958 = vmin.xlane.f32.xlu0 %v957_v34  ;;  %748 = vmin.xlane.f32.xlu1 %v747_v0 }
 0x278   :  { %v1843_v42 = vpop.xlane.xlu0 %982  ;;  %v1845_v17 = vpop.xlane.xlu1 %968  ;;  %v584_v32 = vshll.u32 %v583_v28, 16  ;;  %v709_v28 = vcvt.f32.s32 %v1774_v2 }
 0x279   :  { %vm984_vm14 = vcmp.eq.f32.partialorder %v2045_v35, %v1843_v42  ;;  %vm970_vm15 = vcmp.eq.f32.partialorder %v2046_v23, %v1845_v17  ;;  %v807_v35 = vcvt.f32.s32 %v1736_v39 }
 0x27a   :  { %v985_v30 = vsel %vm984_vm14, %v980_v61, inf  ;;  %v971_v13 = vsel %vm970_vm15, %v966_v10, inf  ;;  %v710_v2 = vshll.u32 %v709_v28, 16 }
 0x27b   :  { %986 = vmin.xlane.f32.xlu0 %v985_v30  ;;  %972 = vmin.xlane.f32.xlu1 %v971_v13  ;;  %v808_v39 = vshll.u32 %v807_v35, 16 }
 0x27c   :  { %v1851_v15 = vpop.xlane.xlu1 %996 }
 0x27d   :  { %vm998_vm0 = vcmp.eq.f32.partialorder %v2047_v43, %v1851_v15  ;;  %v877_v43 = vcvt.f32.s32 %v1744_v47 }
 0x27e   :  { %v999_v40 = vsel %vm998_vm0, %v994_v50, inf }
 0x27f   :  { %1000 = vmin.xlane.f32.xlu1 %v999_v40  ;;  %v878_v47 = vshll.u32 %v877_v43, 16  ;;  %v681_v43 = vcvt.f32.s32 %v1794_v37 }
 0x281   :  { %v682_v37 = vshll.u32 %v681_v43, 16 }
 0x2cc   :  { %v595_v1 = vpop.xlane.xlu0 %594 }
 0x2cd   :  { %v596_v4 = vcvt.f32.s32 %v595_v1 }
 0x2cf   :  { %v599_v31 = vadd.s32 %v598_v55, %v596_v4 }
 0x2d0   :  { %v819_v44 = vpop.xlane.xlu0 %818  ;;  %v609_v5 = vpop.xlane.xlu1 %608 }
 0x2d1   :  { %1009 = vst.msk [vmem:[%s2017_s2 + $0x10] sm:$0xff] %vm1006_vm1, %v599_v31  ;;  %v820_v14 = vcvt.f32.s32 %v819_v44  ;;  %v610_v21 = vcvt.f32.s32 %v609_v5  ;;  %v625_v31 = vcvt.f32.s32 %v1754_v45  ;;  %v891_v44 = vcvt.f32.s32 %v1756_v46 }
 0x2d3   :  { %v823_v22 = vadd.s32 %v822_v62, %v820_v14  ;;  %v613_v36 = vadd.s32 %v612_v58, %v610_v21  ;;  %v626_v45 = vshll.u32 %v625_v31, 16  ;;  %v849_v21 = vcvt.f32.s32 %v1764_v26 }
 0x2d4   :  { %v567_v18 = vpop.xlane.xlu0 %566  ;;  %v833_v51 = vpop.xlane.xlu1 %832  ;;  %v892_v46 = vshll.u32 %v891_v44, 16 }
 0x2d5   :  { %1025 = vst.msk [vmem:[%s2017_s2 + $0x90] sm:$0xff] %vm1006_vm1, %v823_v22  ;;  %1010 = vst.msk [vmem:[%s2017_s2 + $0x18] sm:$0xff] %vm1006_vm1, %v613_v36  ;;  %v568_v25 = vcvt.f32.s32 %v567_v18  ;;  %v834_v34 = vcvt.f32.s32 %v833_v51  ;;  %v850_v26 = vshll.u32 %v849_v21, 16 }
 0x2d7   :  { %v571_v0 = vadd.s32 %v570_v33, %v568_v25  ;;  %v837_v53 = vadd.s32 %v836_v20, %v834_v34  ;;  %v639_v33 = vcvt.f32.s32 %v1766_v54 }
 0x2d8   :  { %v791_v61 = vpop.xlane.xlu0 %790  ;;  %v581_v10 = vpop.xlane.xlu1 %580 }
 0x2d9   :  { %1007 = vst.msk [vmem:[%s2017_s2] sm:$0xff] %vm1006_vm1, %v571_v0  ;;  %1026 = vst.msk [vmem:[%s2017_s2 + $0x98] sm:$0xff] %vm1006_vm1, %v837_v53  ;;  %v792_v23 = vcvt.f32.s32 %v791_v61  ;;  %v582_v30 = vcvt.f32.s32 %v581_v10  ;;  %v640_v54 = vshll.u32 %v639_v33, 16  ;;  %v863_v0 = vcvt.f32.s32 %v1776_v38 }
 0x2da   :  { %v933_v10 = vcvt.f32.s32 %v1784_v63  ;;  %v737_v33 = vcvt.f32.s32 %v1824_v48 }
 0x2db   :  { %v795_v13 = vadd.s32 %v794_v7, %v792_v23  ;;  %v585_v50 = vadd.s32 %v584_v32, %v582_v30  ;;  %v864_v38 = vshll.u32 %v863_v0, 16  ;;  %v723_v23 = vcvt.f32.s32 %v1786_v3 }
 0x2dc   :  { %v651_v40 = vpop.xlane.xlu0 %650  ;;  %v805_v8 = vpop.xlane.xlu1 %804  ;;  %v934_v63 = vshll.u32 %v933_v10, 16  ;;  %v738_v48 = vshll.u32 %v737_v33, 16  ;;  %v989_v10 = vcvt.f32.s32 %v1843_v42 }
 0x2dd   :  { %1023 = vst.msk [vmem:[%s2017_s2 + $0x80] sm:$0xff] %vm1006_vm1, %v795_v13  ;;  %1008 = vst.msk [vmem:[%s2017_s2 + $0x8] sm:$0xff] %vm1006_vm1, %v585_v50  ;;  %v652_v1 = vcvt.f32.s32 %v651_v40  ;;  %v806_v55 = vcvt.f32.s32 %v805_v8  ;;  %v724_v3 = vshll.u32 %v723_v23, 16 }
 0x2de   :  { %v990_v42 = vshll.u32 %v989_v10, 16 }
 0x2df   :  { %v655_v12 = vadd.s32 %v654_v29, %v652_v1  ;;  %v809_v4 = vadd.s32 %v808_v39, %v806_v55  ;;  %v947_v39 = vcvt.f32.s32 %v1796_v6 }
 0x2e0   :  { %v875_v62 = vpop.xlane.xlu0 %874  ;;  %v665_v9 = vpop.xlane.xlu1 %664 }
 0x2e1   :  { %1013 = vst.msk [vmem:[%s2017_s2 + $0x30] sm:$0xff] %vm1006_vm1, %v655_v12  ;;  %1024 = vst.msk [vmem:[%s2017_s2 + $0x88] sm:$0xff] %vm1006_vm1, %v809_v4  ;;  %v876_v5 = vcvt.f32.s32 %v875_v62  ;;  %v666_v58 = vcvt.f32.s32 %v665_v9  ;;  %v905_v4 = vcvt.f32.s32 %v1804_v57  ;;  %v948_v6 = vshll.u32 %v947_v39, 16 }
 0x2e2   :  { %v695_v62 = vcvt.f32.s32 %v1806_v24 }
 0x2e3   :  { %v879_v27 = vadd.s32 %v878_v47, %v876_v5  ;;  %v669_v14 = vadd.s32 %v668_v16, %v666_v58  ;;  %v906_v57 = vshll.u32 %v905_v4, 16  ;;  %v765_v58 = vcvt.f32.s32 %v1814_v41 }
 0x2e4   :  { %v623_v22 = vpop.xlane.xlu0 %622  ;;  %v889_v36 = vpop.xlane.xlu1 %888  ;;  %v696_v24 = vshll.u32 %v695_v62, 16 }
 0x2e5   :  { %1029 = vst.msk [vmem:[%s2017_s2 + $0xb0] sm:$0xff] %vm1006_vm1, %v879_v27  ;;  %1014 = vst.msk [vmem:[%s2017_s2 + $0x38] sm:$0xff] %vm1006_vm1, %v669_v14  ;;  %v624_v11 = vcvt.f32.s32 %v623_v22  ;;  %v890_v18 = vcvt.f32.s32 %v889_v36  ;;  %v766_v41 = vshll.u32 %v765_v58, 16 }
 0x2e7   :  { %v627_v51 = vadd.s32 %v626_v45, %v624_v11  ;;  %v893_v20 = vadd.s32 %v892_v46, %v890_v18  ;;  %v919_v45 = vcvt.f32.s32 %v1816_v56 }
 0x2e8   :  { %v847_v25 = vpop.xlane.xlu0 %846  ;;  %v637_v34 = vpop.xlane.xlu1 %636 }
 0x2e9   :  { %1011 = vst.msk [vmem:[%s2017_s2 + $0x20] sm:$0xff] %vm1006_vm1, %v627_v51  ;;  %1030 = vst.msk [vmem:[%s2017_s2 + $0xb8] sm:$0xff] %vm1006_vm1, %v893_v20  ;;  %v848_v53 = vcvt.f32.s32 %v847_v25  ;;  %v638_v7 = vcvt.f32.s32 %v637_v34  ;;  %v920_v56 = vshll.u32 %v919_v45, 16  ;;  %v779_v51 = vcvt.f32.s32 %v1826_v49 }
 0x2ea   :  { %v961_v34 = vcvt.f32.s32 %v1834_v59 }
 0x2eb   :  { %v851_v19 = vadd.s32 %v850_v26, %v848_v53  ;;  %v641_v61 = vadd.s32 %v640_v54, %v638_v7  ;;  %v780_v49 = vshll.u32 %v779_v51, 16  ;;  %v751_v53 = vcvt.f32.s32 %v1836_v60 }
 0x2ec   :  { %v707_v32 = vpop.xlane.xlu0 %706  ;;  %v861_v35 = vpop.xlane.xlu1 %860  ;;  %v962_v59 = vshll.u32 %v961_v34, 16 }
 0x2ed   :  { %1027 = vst.msk [vmem:[%s2017_s2 + $0xa0] sm:$0xff] %vm1006_vm1, %v851_v19  ;;  %1012 = vst.msk [vmem:[%s2017_s2 + $0x28] sm:$0xff] %vm1006_vm1, %v641_v61  ;;  %v708_v30 = vcvt.f32.s32 %v707_v32  ;;  %v862_v13 = vcvt.f32.s32 %v861_v35  ;;  %v752_v60 = vshll.u32 %v751_v53, 16 }
 0x2ef   :  { %v711_v50 = vadd.s32 %v710_v2, %v708_v30  ;;  %v865_v29 = vadd.s32 %v864_v38, %v862_v13  ;;  %v975_v38 = vcvt.f32.s32 %v1845_v17  ;;  %v1003_v17 = vcvt.f32.s32 %v1851_v15 }
 0x2f0   :  { %v931_v40 = vpop.xlane.xlu0 %930  ;;  %v721_v8 = vpop.xlane.xlu1 %720 }
 0x2f1   :  { %1017 = vst.msk [vmem:[%s2017_s2 + $0x50] sm:$0xff] %vm1006_vm1, %v711_v50  ;;  %1028 = vst.msk [vmem:[%s2017_s2 + $0xa8] sm:$0xff] %vm1006_vm1, %v865_v29  ;;  %v932_v52 = vcvt.f32.s32 %v931_v40  ;;  %v722_v1 = vcvt.f32.s32 %v721_v8  ;;  %v976_v43 = vshll.u32 %v975_v38, 16 }
 0x2f3   :  { %v935_v55 = vadd.s32 %v934_v63, %v932_v52  ;;  %v725_v12 = vadd.s32 %v724_v3, %v722_v1  ;;  %v1004_v1 = vshll.u32 %v1003_v17, 16 }
 0x2f4   :  { %v679_v47 = vpop.xlane.xlu0 %678  ;;  %v945_v31 = vpop.xlane.xlu1 %944 }
 0x2f5   :  { %1033 = vst.msk [vmem:[%s2017_s2 + $0xd0] sm:$0xff] %vm1006_vm1, %v935_v55  ;;  %1018 = vst.msk [vmem:[%s2017_s2 + $0x58] sm:$0xff] %vm1006_vm1, %v725_v12  ;;  %v680_v9 = vcvt.f32.s32 %v679_v47  ;;  %v946_v16 = vcvt.f32.s32 %v945_v31 }
 0x2f7   :  { %v683_v44 = vadd.s32 %v682_v37, %v680_v9  ;;  %v949_v5 = vadd.s32 %v948_v6, %v946_v16 }
 0x2f8   :  { %v903_v27 = vpop.xlane.xlu0 %902  ;;  %v693_v14 = vpop.xlane.xlu1 %692 }
 0x2f9   :  { %1015 = vst.msk [vmem:[%s2017_s2 + $0x40] sm:$0xff] %vm1006_vm1, %v683_v44  ;;  %1034 = vst.msk [vmem:[%s2017_s2 + $0xd8] sm:$0xff] %vm1006_vm1, %v949_v5  ;;  %v904_v21 = vcvt.f32.s32 %v903_v27  ;;  %v694_v22 = vcvt.f32.s32 %v693_v14 }
 0x2fb   :  { %v907_v36 = vadd.s32 %v906_v57, %v904_v21  ;;  %v697_v46 = vadd.s32 %v696_v24, %v694_v22 }
 0x2fc   :  { %v763_v11 = vpop.xlane.xlu0 %762  ;;  %v917_v18 = vpop.xlane.xlu1 %916 }
 0x2fd   :  { %1031 = vst.msk [vmem:[%s2017_s2 + $0xc0] sm:$0xff] %vm1006_vm1, %v907_v36  ;;  %1016 = vst.msk [vmem:[%s2017_s2 + $0x48] sm:$0xff] %vm1006_vm1, %v697_v46  ;;  %v764_v20 = vcvt.f32.s32 %v763_v11  ;;  %v918_v26 = vcvt.f32.s32 %v917_v18 }
 0x2ff   :  { %v767_v28 = vadd.s32 %v766_v41, %v764_v20  ;;  %v921_v25 = vadd.s32 %v920_v56, %v918_v26 }
 0x300   :  { %v735_v54 = vpop.xlane.xlu0 %734  ;;  %v777_v0 = vpop.xlane.xlu1 %776 }
 0x301   :  { %1021 = vst.msk [vmem:[%s2017_s2 + $0x70] sm:$0xff] %vm1006_vm1, %v767_v28  ;;  %1032 = vst.msk [vmem:[%s2017_s2 + $0xc8] sm:$0xff] %vm1006_vm1, %v921_v25  ;;  %v736_v7 = vcvt.f32.s32 %v735_v54  ;;  %v778_v19 = vcvt.f32.s32 %v777_v0 }
 0x303   :  { %v739_v61 = vadd.s32 %v738_v48, %v736_v7  ;;  %v781_v2 = vadd.s32 %v780_v49, %v778_v19 }
 0x304   :  { %v959_v32 = vpop.xlane.xlu0 %958  ;;  %v749_v35 = vpop.xlane.xlu1 %748 }
 0x305   :  { %1019 = vst.msk [vmem:[%s2017_s2 + $0x60] sm:$0xff] %vm1006_vm1, %v739_v61  ;;  %1022 = vst.msk [vmem:[%s2017_s2 + $0x78] sm:$0xff] %vm1006_vm1, %v781_v2  ;;  %v960_v23 = vcvt.f32.s32 %v959_v32  ;;  %v750_v30 = vcvt.f32.s32 %v749_v35 }
 0x307   :  { %v963_v13 = vadd.s32 %v962_v59, %v960_v23  ;;  %v753_v50 = vadd.s32 %v752_v60, %v750_v30 }
 0x308   :  { %v987_v29 = vpop.xlane.xlu0 %986  ;;  %v973_v63 = vpop.xlane.xlu1 %972 }
 0x309   :  { %1035 = vst.msk [vmem:[%s2017_s2 + $0xe0] sm:$0xff] %vm1006_vm1, %v963_v13  ;;  %1020 = vst.msk [vmem:[%s2017_s2 + $0x68] sm:$0xff] %vm1006_vm1, %v753_v50  ;;  %v988_v40 = vcvt.f32.s32 %v987_v29  ;;  %v974_v8 = vcvt.f32.s32 %v973_v63 }
 0x30b   :  { %v991_v3 = vadd.s32 %v990_v42, %v988_v40  ;;  %v977_v39 = vadd.s32 %v976_v43, %v974_v8 }
 0x30c   :  { %v1001_v52 = vpop.xlane.xlu1 %1000 }
 0x30d   :  { %1037 = vst.msk [vmem:[%s2017_s2 + $0xf0] sm:$0xff] %vm1006_vm1, %v991_v3  ;;  %1036 = vst.msk [vmem:[%s2017_s2 + $0xe8] sm:$0xff] %vm1006_vm1, %v977_v39  ;;  %v1002_v15 = vcvt.f32.s32 %v1001_v52 }
 0x30f   :  { %v1005_v55 = vadd.s32 %v1004_v1, %v1002_v15 }
 0x311   :  { %1038 = vst.msk [vmem:[%s2017_s2 + $0xf8] sm:$0xff] %vm1006_vm1, %v1005_v55 }
 0x312   :  { %1043 = vsyncpa [#allocation3], 1 }
 0x313   :  { %1044 = vsyncpa [#allocation5], 1 }

// kernel: tpu_custom_call.1
= control target key start
LH: loop header
LB: loop body
LE: loop exit
PB: predicated region body
PF: predicated region fallthrough
CT: control target
= control target key end

     0   :  { %7 = vsyncpa [#allocation3], 0  ;;  %s2015_s0 = inlined_call_operand.hbm [shape: bf16[256,128], index: 0, kind: input, shape index: {}]   ;;  %s2016_s1 = inlined_call_operand.hbm [shape: bf16[128,128], index: 1, kind: input, shape index: {}]   ;;  %s2017_s2 = inlined_call_operand.vmem [shape: s32[256,1], index: 2, kind: output, shape index: {}]  }
   0x1   :  { %8 = vsyncpa [#allocation5], 0  ;;  %s1233_s9 = smov [#allocation2]   ;;  %s1185_s13 = scalar_lea.hbm %s2015_s0, 2048 }
   0x2   :  { %s14_s10 = sshll.u32 %s1233_s9, 4  ;;  %p1186_p0 = scmp.ne.s32.totalorder %s2015_s0, %s1185_s13  ;;  %s15_s10 = int_to_ptr.vmem [resolvable:$true] %s14_s10 }
   0x3   :  { %p1189_p1 = scmp.lt.u32.totalorder %s1185_s13, %s2015_s0 }
   0x5   :  { %p1191_p2 = pnand %p1189_p1, %p1186_p0 }
   0x7   :  { %1194 = shalt.err (!%p1191_p2)
}
   0x8   :  { %s1195_s18 = scalar_lea.vmem %s15_s10, 2048  ;;  %p1200_p4 = scmp.lt.s32.totalorder %s15_s10, %s15_s10 }
   0x9   :  { %p1196_p3 = scmp.ne.s32.totalorder %s15_s10, %s1195_s18  ;;  %p1201_p5 = scmp.lt.s32.totalorder %s1195_s18, %s1195_s18 }
   0xb   :  { %p1202_p6 = por %p1201_p5, %p1200_p4 }
   0xd   :  { %p1203_p7 = pnand %p1202_p6, %p1196_p3 }
   0xf   :  { %1206 = shalt.err (!%p1203_p7)
}
  0x10   :  { %s1234_s19 = smov 64   ;;  %s1235_s20 = smov 4  }
  0x11   :  { %20 = dma.hbm_to_vmem [thread:$0]  %s2015_s0, 2048, %s15_s10, [#allocation3], %s1234_s19, %s1234_s19, %s1235_s20  }
  0x12   :  { %s1236_s23 = smov [#allocation4]   ;;  %s1207_s27 = scalar_lea.hbm %s2016_s1, 1024 }
  0x13   :  { %s26_s24 = sshll.u32 %s1236_s23, 4  ;;  %p1208_p8 = scmp.ne.s32.totalorder %s2016_s1, %s1207_s27  ;;  %s27_s24 = int_to_ptr.vmem [resolvable:$true] %s26_s24 }
  0x14   :  { %p1211_p9 = scmp.lt.u32.totalorder %s1207_s27, %s2016_s1 }
  0x16   :  { %p1213_p10 = pnand %p1211_p9, %p1208_p8 }
  0x18   :  { %1216 = shalt.err (!%p1213_p10)
}
  0x19   :  { %s1217_s4 = scalar_lea.vmem %s27_s24, 1024  ;;  %p1222_p12 = scmp.lt.s32.totalorder %s27_s24, %s27_s24 }
  0x1a   :  { %p1218_p11 = scmp.ne.s32.totalorder %s27_s24, %s1217_s4  ;;  %p1223_p13 = scmp.lt.s32.totalorder %s1217_s4, %s1217_s4 }
  0x1c   :  { %p1224_p0 = por %p1223_p13, %p1222_p12 }
  0x1e   :  { %p1225_p1 = pnand %p1224_p0, %p1218_p11 }
  0x20   :  { %1228 = shalt.err (!%p1225_p1)
}
  0x21   :  { %32 = dma.hbm_to_vmem [thread:$0]  %s2016_s1, 1024, %s27_s24, [#allocation5], %s1234_s19, %s1234_s19, %s1235_s20  }
  0x22   :  { %1229 = dma.done.wait [#allocation3], 2048  }
  0x23   :  { %1230 = vsyncadd [#allocation3], 4294965248 }
  0x24   :  { %1231 = dma.done.wait [#allocation5], 1024  }
  0x25   :  { %1232 = vsyncadd [#allocation5], 4294966272  ;;  %v1161_v0 = vld [vmem:[#allocation4] sm:$0xff]   ;;  %v1162_v1 = vld [vmem:[#allocation4 + $0x8] sm:$0xff]   ;;  %v393_v24 = vlaneseq }
  0x26   :  { %1093 = vmatprep.subr.bf16.mxu0 %v1161_v0  ;;  %1141 = vmatprep.subr.bf16.mxu1 %v1161_v0  ;;  %v1163_v2 = vld [vmem:[#allocation4 + $0x10] sm:$0xff]   ;;  %v1164_v3 = vld [vmem:[#allocation4 + $0x18] sm:$0xff]   ;;  %v1169_v4 = vld [vmem:[#allocation2] sm:$0xff]  }
  0x27   :  { %1094 = vmatpush3.bf16.msra.mxu0 %v1161_v0  ;;  %1149 = vmatpush3.bf16.msra.mxu1 %v1161_v0  ;;  %v1170_v5 = vld [vmem:[#allocation2 + $0x40] sm:$0xff]   ;;  %v1166_v7 = vld [vmem:[#allocation4 + $0x28] sm:$0xff]   ;;  %v1167_v8 = vld [vmem:[#allocation4 + $0x30] sm:$0xff]   ;;  %v1276_v25 = vand.u32 127, %v393_v24 }
  0x28   :  { %1095 = vmatprep.subr.bf16.mxu0 %v1162_v1  ;;  %1142 = vmatprep.subr.bf16.mxu1 %v1162_v1  ;;  %v1165_v6 = vld [vmem:[#allocation4 + $0x20] sm:$0xff]   ;;  %v1168_v9 = vld [vmem:[#allocation4 + $0x38] sm:$0xff]   ;;  %v1171_v10 = vld [vmem:[#allocation2 + $0x8] sm:$0xff]  }
  0x29   :  { %1109 = vmatprep.mubr.bf16.mxu0 %v1169_v4  ;;  %1125 = vmatprep.mubr.bf16.mxu1 %v1170_v5  ;;  %v1172_v11 = vld [vmem:[#allocation2 + $0x48] sm:$0xff]   ;;  %v1173_v12 = vld [vmem:[#allocation2 + $0x10] sm:$0xff]   ;;  %v1174_v14 = vld [vmem:[#allocation2 + $0x18] sm:$0xff]   ;;  %vm395_vm0 = vcmp.lt.s32.totalorder %v1276_v25, 36 }
  0x2a   :  { %v1175_v13 = vld [vmem:[#allocation2 + $0x50] sm:$0xff]   ;;  %v1176_v15 = vld [vmem:[#allocation2 + $0x58] sm:$0xff]   ;;  %v1177_v16 = vld [vmem:[#allocation2 + $0x20] sm:$0xff]  }
  0x2b   :  { %1096 = vmatpush3.bf16.msra.mxu0 %v1162_v1  ;;  %1150 = vmatpush3.bf16.msra.mxu1 %v1162_v1  ;;  %v1179_v17 = vld [vmem:[#allocation2 + $0x60] sm:$0xff]   ;;  %v1178_v18 = vld [vmem:[#allocation2 + $0x28] sm:$0xff]   ;;  %v1181_v20 = vld [vmem:[#allocation2 + $0x30] sm:$0xff]  }
  0x2c   :  { %1097 = vmatprep.subr.bf16.mxu0 %v1163_v2  ;;  %1143 = vmatprep.subr.bf16.mxu1 %v1163_v2  ;;  %v1180_v19 = vld [vmem:[#allocation2 + $0x68] sm:$0xff]   ;;  %v1183_v21 = vld [vmem:[#allocation2 + $0x70] sm:$0xff]   ;;  %v1182_v22 = vld [vmem:[#allocation2 + $0x38] sm:$0xff]  }
  0x2d   :  { %v1184_v23 = vld [vmem:[#allocation2 + $0x78] sm:$0xff]  }
  0x2f   :  { %1098 = vmatpush3.bf16.msra.mxu0 %v1163_v2  ;;  %1151 = vmatpush3.bf16.msra.mxu1 %v1163_v2 }
  0x30   :  { %1099 = vmatprep.subr.bf16.mxu0 %v1164_v3  ;;  %1144 = vmatprep.subr.bf16.mxu1 %v1164_v3 }
  0x33   :  { %1100 = vmatpush3.bf16.msra.mxu0 %v1164_v3  ;;  %1152 = vmatpush3.bf16.msra.mxu1 %v1164_v3 }
  0x34   :  { %1101 = vmatprep.subr.bf16.mxu0 %v1165_v6  ;;  %1145 = vmatprep.subr.bf16.mxu1 %v1165_v6 }
  0x37   :  { %1102 = vmatpush3.bf16.msra.mxu0 %v1165_v6  ;;  %1153 = vmatpush3.bf16.msra.mxu1 %v1165_v6 }
  0x38   :  { %1103 = vmatprep.subr.bf16.mxu0 %v1166_v7  ;;  %1146 = vmatprep.subr.bf16.mxu1 %v1166_v7 }
  0x3b   :  { %1104 = vmatpush3.bf16.msra.mxu0 %v1166_v7  ;;  %1154 = vmatpush3.bf16.msra.mxu1 %v1166_v7 }
  0x3c   :  { %1105 = vmatprep.subr.bf16.mxu0 %v1167_v8  ;;  %1147 = vmatprep.subr.bf16.mxu1 %v1167_v8 }
  0x3f   :  { %1106 = vmatpush3.bf16.msra.mxu0 %v1167_v8  ;;  %1155 = vmatpush3.bf16.msra.mxu1 %v1167_v8 }
  0x40   :  { %1107 = vmatprep.subr.bf16.mxu0 %v1168_v9  ;;  %1148 = vmatprep.subr.bf16.mxu1 %v1168_v9 }
  0x43   :  { %1108 = vmatpush3.bf16.msra.mxu0 %v1168_v9  ;;  %1156 = vmatpush3.bf16.msra.mxu1 %v1168_v9 }
  0x46   :  { %1110 = vmatmul.mubr.bf16.vlgmr.msra.gmra.mrb[0].mxu0 %v1171_v10  ;;  %1126 = vmatmul.mubr.bf16.vlgmr.msra.gmra.mrb[0].mxu1 %v1172_v11 }
  0x47   :  { %1113 = vmatprep.mubr.bf16.mxu0 %v1173_v12  ;;  %1129 = vmatprep.mubr.bf16.mxu1 %v1175_v13 }
  0x4e   :  { %1114 = vmatmul.mubr.bf16.gmra.mrb[4].mxu0 %v1174_v14  ;;  %1130 = vmatmul.mubr.bf16.gmra.mrb[4].mxu1 %v1176_v15 }
  0x4f   :  { %1117 = vmatprep.mubr.bf16.mxu0 %v1177_v16  ;;  %1133 = vmatprep.mubr.bf16.mxu1 %v1179_v17 }
  0x56   :  { %1118 = vmatmul.mubr.bf16.gmra.mrb[8].mxu0 %v1178_v18  ;;  %1134 = vmatmul.mubr.bf16.gmra.mrb[8].mxu1 %v1180_v19 }
  0x57   :  { %1121 = vmatprep.mubr.bf16.mxu0 %v1181_v20  ;;  %1137 = vmatprep.mubr.bf16.mxu1 %v1183_v21 }
  0x5e   :  { %1122 = vmatmul.mubr.bf16.gmra.mrb[12].mxu0 %v1182_v22  ;;  %1138 = vmatmul.mubr.bf16.gmra.mrb[12].mxu1 %v1184_v23 }
 0x119   :  { %v1111_v26 = vpop.f32.mrb[0].mxu0  ;;  %v1127_v27 = vpop.f32.mrb[0].mxu1 }
 0x11a   :  { %v266_v28 = vpop.f32.mrb[1].mxu0  ;;  %v330_v29 = vpop.f32.mrb[1].mxu1  ;;  %v1281_v30 = vsel %vm395_vm0, %v1127_v27, -3e+38  ;;  %v1285_v31 = vsel %vm395_vm0, %v1111_v26, -3e+38 }
 0x11b   :  { %466 = vmax.xlane.f32.xlu0 %v1281_v30  ;;  %v1128_v32 = vpop.f32.mrb[2].mxu1  ;;  %434 = vmax.xlane.f32.xlu1 %v1285_v31  ;;  %v1112_v33 = vpop.f32.mrb[2].mxu0  ;;  %v1291_v36 = vsel %vm395_vm0, %v266_v28, -3e+38  ;;  %v1301_v40 = vsel %vm395_vm0, %v330_v29, -3e+38 }
 0x11c   :  { %v269_v34 = vpop.f32.mrb[3].mxu0  ;;  %v333_v35 = vpop.f32.mrb[3].mxu1  ;;  %v1295_v37 = vsel %vm395_vm0, %v1112_v33, -3e+38  ;;  %v1305_v41 = vsel %vm395_vm0, %v1128_v32, -3e+38 }
 0x11d   :  { %v1311_v48 = vsel %vm395_vm0, %v333_v35, -3e+38  ;;  %v1315_v49 = vsel %vm395_vm0, %v269_v34, -3e+38 }
 0x11f   :  { %430 = vmax.xlane.f32.xlu0 %v1291_v36  ;;  %436 = vmax.xlane.f32.xlu1 %v1295_v37 }
 0x121   :  { %v1115_v38 = vpop.f32.mrb[4].mxu0  ;;  %v1131_v39 = vpop.f32.mrb[4].mxu1 }
 0x122   :  { %v282_v42 = vpop.f32.mrb[5].mxu0  ;;  %v346_v43 = vpop.f32.mrb[5].mxu1  ;;  %v1321_v50 = vsel %vm395_vm0, %v1115_v38, -3e+38  ;;  %v1331_v58 = vsel %vm395_vm0, %v1131_v39, -3e+38 }
 0x123   :  { %462 = vmax.xlane.f32.xlu0 %v1301_v40  ;;  %468 = vmax.xlane.f32.xlu1 %v1305_v41  ;;  %v1116_v44 = vpop.f32.mrb[6].mxu0  ;;  %v1132_v45 = vpop.f32.mrb[6].mxu1  ;;  %v1341_v0 = vsel %vm395_vm0, %v282_v42, -3e+38  ;;  %v1351_v8 = vsel %vm395_vm0, %v346_v43, -3e+38 }
 0x124   :  { %v285_v46 = vpop.f32.mrb[7].mxu0  ;;  %v349_v47 = vpop.f32.mrb[7].mxu1  ;;  %v1325_v51 = vsel %vm395_vm0, %v1116_v44, -3e+38  ;;  %v1335_v59 = vsel %vm395_vm0, %v1132_v45, -3e+38 }
 0x125   :  { %v1345_v1 = vsel %vm395_vm0, %v285_v46, -3e+38  ;;  %v1355_v9 = vsel %vm395_vm0, %v349_v47, -3e+38 }
 0x127   :  { %464 = vmax.xlane.f32.xlu1 %v1311_v48  ;;  %432 = vmax.xlane.f32.xlu0 %v1315_v49 }
 0x129   :  { %v1119_v52 = vpop.f32.mrb[8].mxu0  ;;  %v1135_v53 = vpop.f32.mrb[8].mxu1 }
 0x12a   :  { %v298_v54 = vpop.f32.mrb[9].mxu0  ;;  %v362_v55 = vpop.f32.mrb[9].mxu1  ;;  %v1361_v10 = vsel %vm395_vm0, %v1119_v52, -3e+38  ;;  %v1371_v12 = vsel %vm395_vm0, %v1135_v53, -3e+38 }
 0x12b   :  { %442 = vmax.xlane.f32.xlu0 %v1321_v50  ;;  %444 = vmax.xlane.f32.xlu1 %v1325_v51  ;;  %v1120_v56 = vpop.f32.mrb[10].mxu0  ;;  %v1136_v57 = vpop.f32.mrb[10].mxu1  ;;  %v1381_v14 = vsel %vm395_vm0, %v298_v54, -3e+38  ;;  %v1391_v16 = vsel %vm395_vm0, %v362_v55, -3e+38 }
 0x12c   :  { %v301_v60 = vpop.f32.mrb[11].mxu0  ;;  %v365_v61 = vpop.f32.mrb[11].mxu1  ;;  %v1365_v11 = vsel %vm395_vm0, %v1120_v56, -3e+38  ;;  %v1375_v13 = vsel %vm395_vm0, %v1136_v57, -3e+38 }
 0x12d   :  { %v1385_v15 = vsel %vm395_vm0, %v301_v60, -3e+38  ;;  %v1395_v17 = vsel %vm395_vm0, %v365_v61, -3e+38 }
 0x12f   :  { %474 = vmax.xlane.f32.xlu0 %v1331_v58  ;;  %476 = vmax.xlane.f32.xlu1 %v1335_v59 }
 0x131   :  { %v1123_v62 = vpop.f32.mrb[12].mxu0  ;;  %v1139_v63 = vpop.f32.mrb[12].mxu1 }
 0x132   :  { %v314_v2 = vpop.f32.mrb[13].mxu0  ;;  %v378_v3 = vpop.f32.mrb[13].mxu1  ;;  %v1401_v18 = vsel %vm395_vm0, %v1123_v62, -3e+38  ;;  %v1431_v24 = vsel %vm395_vm0, %v1139_v63, -3e+38 }
 0x133   :  { %438 = vmax.xlane.f32.xlu0 %v1341_v0  ;;  %440 = vmax.xlane.f32.xlu1 %v1345_v1  ;;  %v1124_v4 = vpop.f32.mrb[14].mxu0  ;;  %v1140_v5 = vpop.f32.mrb[14].mxu1  ;;  %v1411_v20 = vsel %vm395_vm0, %v314_v2, -3e+38  ;;  %v1421_v22 = vsel %vm395_vm0, %v378_v3, -3e+38 }
 0x134   :  { %v317_v6 = vpop.f32.mrb[15].mxu0  ;;  %v381_v7 = vpop.f32.mrb[15].mxu1  ;;  %v1405_v19 = vsel %vm395_vm0, %v1124_v4, -3e+38  ;;  %v1435_v26 = vsel %vm395_vm0, %v1140_v5, -3e+38 }
 0x135   :  { %v1415_v21 = vsel %vm395_vm0, %v317_v6, -3e+38  ;;  %v1425_v23 = vsel %vm395_vm0, %v381_v7, -3e+38 }
 0x137   :  { %470 = vmax.xlane.f32.xlu0 %v1351_v8  ;;  %472 = vmax.xlane.f32.xlu1 %v1355_v9 }
 0x13b   :  { %450 = vmax.xlane.f32.xlu0 %v1361_v10  ;;  %452 = vmax.xlane.f32.xlu1 %v1365_v11 }
 0x13f   :  { %482 = vmax.xlane.f32.xlu0 %v1371_v12  ;;  %484 = vmax.xlane.f32.xlu1 %v1375_v13 }
 0x143   :  { %446 = vmax.xlane.f32.xlu0 %v1381_v14  ;;  %448 = vmax.xlane.f32.xlu1 %v1385_v15 }
 0x147   :  { %478 = vmax.xlane.f32.xlu0 %v1391_v16  ;;  %480 = vmax.xlane.f32.xlu1 %v1395_v17 }
 0x14b   :  { %458 = vmax.xlane.f32.xlu0 %v1401_v18  ;;  %460 = vmax.xlane.f32.xlu1 %v1405_v19 }
 0x14f   :  { %454 = vmax.xlane.f32.xlu0 %v1411_v20  ;;  %456 = vmax.xlane.f32.xlu1 %v1415_v21 }
 0x153   :  { %486 = vmax.xlane.f32.xlu0 %v1421_v22  ;;  %488 = vmax.xlane.f32.xlu1 %v1425_v23 }
 0x157   :  { %490 = vmax.xlane.f32.xlu0 %v1431_v24  ;;  %492 = vmax.xlane.f32.xlu1 %v1435_v26 }
 0x1a8   :  { %v467_v27 = vpop.xlane.xlu0 %466  ;;  %v435_v28 = vpop.xlane.xlu1 %434 }
 0x1a9   :  { %vm512_vm1 = vcmp.eq.f32.partialorder %v1281_v30, %v467_v27  ;;  %vm496_vm2 = vcmp.eq.f32.partialorder %v1285_v31, %v435_v28 }
 0x1aa   :  { %v1442_v29 = vsel %vm512_vm1, %v1276_v25, 128  ;;  %v1445_v32 = vsel %vm496_vm2, %v1276_v25, 128 }
 0x1ab   :  { %v587_v33 = vshra.s32 %v1445_v32, 16  ;;  %v811_v30 = vshra.s32 %v1442_v29, 16 }
 0x1ac   :  { %v431_v34 = vpop.xlane.xlu0 %430  ;;  %v437_v35 = vpop.xlane.xlu1 %436 }
 0x1ad   :  { %vm494_vm3 = vcmp.eq.f32.partialorder %v1291_v36, %v431_v34  ;;  %vm497_vm4 = vcmp.eq.f32.partialorder %v1295_v37, %v437_v35  ;;  %v1450_v38 = vcvt.s32.f32 %v587_v33  ;;  %v1464_v37 = vcvt.s32.f32 %v811_v30 }
 0x1ae   :  { %v1454_v31 = vsel %vm494_vm3, %v1276_v25, 128  ;;  %v1457_v39 = vsel %vm497_vm4, %v1276_v25, 128 }
 0x1af   :  { %590 = vmin.xlane.f32.xlu0 %v1450_v38  ;;  %v601_v42 = vshra.s32 %v1457_v39, 16  ;;  %v559_v36 = vshra.s32 %v1454_v31, 16 }
 0x1b0   :  { %v463_v43 = vpop.xlane.xlu0 %462  ;;  %v469_v44 = vpop.xlane.xlu1 %468 }
 0x1b1   :  { %vm510_vm5 = vcmp.eq.f32.partialorder %v1301_v40, %v463_v43  ;;  %vm513_vm6 = vcmp.eq.f32.partialorder %v1305_v41, %v469_v44  ;;  %v1466_v45 = vcvt.s32.f32 %v601_v42  ;;  %v1477_v54 = vcvt.s32.f32 %v559_v36 }
 0x1b2   :  { %v1469_v46 = vsel %vm510_vm5, %v1276_v25, 128  ;;  %v1472_v47 = vsel %vm513_vm6, %v1276_v25, 128 }
 0x1b3   :  { %814 = vmin.xlane.f32.xlu0 %v1464_v37  ;;  %604 = vmin.xlane.f32.xlu1 %v1466_v45  ;;  %v825_v52 = vshra.s32 %v1472_v47, 16  ;;  %v783_v55 = vshra.s32 %v1469_v46, 16 }
 0x1b4   :  { %v465_v53 = vpop.xlane.xlu1 %464  ;;  %v433_v40 = vpop.xlane.xlu0 %432 }
 0x1b5   :  { %vm511_vm7 = vcmp.eq.f32.partialorder %v1311_v48, %v465_v53  ;;  %vm495_vm8 = vcmp.eq.f32.partialorder %v1315_v49, %v433_v40  ;;  %v1481_v41 = vcvt.s32.f32 %v825_v52  ;;  %v1496_v62 = vcvt.s32.f32 %v783_v55 }
 0x1b6   :  { %v1485_v56 = vsel %vm511_vm7, %v1276_v25, 128  ;;  %v1488_v57 = vsel %vm495_vm8, %v1276_v25, 128 }
 0x1b7   :  { %562 = vmin.xlane.f32.xlu0 %v1477_v54  ;;  %828 = vmin.xlane.f32.xlu1 %v1481_v41  ;;  %v573_v60 = vshra.s32 %v1488_v57, 16  ;;  %v797_v49 = vshra.s32 %v1485_v56, 16 }
 0x1b8   :  { %v443_v61 = vpop.xlane.xlu0 %442  ;;  %v445_v48 = vpop.xlane.xlu1 %444 }
 0x1b9   :  { %vm500_vm9 = vcmp.eq.f32.partialorder %v1321_v50, %v443_v61  ;;  %vm501_vm10 = vcmp.eq.f32.partialorder %v1325_v51, %v445_v48  ;;  %v1498_v63 = vcvt.s32.f32 %v573_v60  ;;  %v1509_v6 = vcvt.s32.f32 %v797_v49 }
 0x1ba   :  { %v1501_v2 = vsel %vm500_vm9, %v1276_v25, 128  ;;  %v1504_v3 = vsel %vm501_vm10, %v1276_v25, 128 }
 0x1bb   :  { %786 = vmin.xlane.f32.xlu0 %v1496_v62  ;;  %576 = vmin.xlane.f32.xlu1 %v1498_v63  ;;  %v643_v4 = vshra.s32 %v1501_v2, 16  ;;  %v657_v7 = vshra.s32 %v1504_v3, 16 }
 0x1bc   :  { %v475_v5 = vpop.xlane.xlu0 %474  ;;  %v477_v50 = vpop.xlane.xlu1 %476 }
 0x1bd   :  { %vm516_vm11 = vcmp.eq.f32.partialorder %v1331_v58, %v475_v5  ;;  %vm517_vm12 = vcmp.eq.f32.partialorder %v1335_v59, %v477_v50  ;;  %v1513_v51 = vcvt.s32.f32 %v643_v4  ;;  %v1530_v30 = vcvt.s32.f32 %v657_v7 }
 0x1be   :  { %v1517_v27 = vsel %vm516_vm11, %v1276_v25, 128  ;;  %v1520_v28 = vsel %vm517_vm12, %v1276_v25, 128 }
 0x1bf   :  { %646 = vmin.xlane.f32.xlu0 %v1513_v51  ;;  %800 = vmin.xlane.f32.xlu1 %v1509_v6  ;;  %v867_v33 = vshra.s32 %v1517_v27, 16  ;;  %v881_v59 = vshra.s32 %v1520_v28, 16 }
 0x1c0   :  { %v439_v34 = vpop.xlane.xlu0 %438  ;;  %v441_v58 = vpop.xlane.xlu1 %440 }
 0x1c1   :  { %vm498_vm13 = vcmp.eq.f32.partialorder %v1341_v0, %v439_v34  ;;  %vm499_vm14 = vcmp.eq.f32.partialorder %v1345_v1, %v441_v58  ;;  %v1528_v35 = vcvt.s32.f32 %v867_v33  ;;  %v1541_v52 = vcvt.s32.f32 %v881_v59 }
 0x1c2   :  { %v1533_v42 = vsel %vm498_vm13, %v1276_v25, 128  ;;  %v1536_v43 = vsel %vm499_vm14, %v1276_v25, 128 }
 0x1c3   :  { %870 = vmin.xlane.f32.xlu0 %v1528_v35  ;;  %660 = vmin.xlane.f32.xlu1 %v1530_v30  ;;  %v615_v44 = vshra.s32 %v1533_v42, 16  ;;  %v629_v53 = vshra.s32 %v1536_v43, 16 }
 0x1c4   :  { %v471_v36 = vpop.xlane.xlu0 %470  ;;  %v473_v0 = vpop.xlane.xlu1 %472 }
 0x1c5   :  { %vm514_vm15 = vcmp.eq.f32.partialorder %v1351_v8, %v471_v36  ;;  %vm515_vm0 = vcmp.eq.f32.partialorder %v1355_v9, %v473_v0  ;;  %v1545_v1 = vcvt.s32.f32 %v615_v44  ;;  %v1562_v49 = vcvt.s32.f32 %v629_v53 }
 0x1c6   :  { %v1549_v40 = vsel %vm514_vm15, %v1276_v25, 128  ;;  %v1552_v55 = vsel %vm515_vm0, %v1276_v25, 128 }
 0x1c7   :  { %618 = vmin.xlane.f32.xlu0 %v1545_v1  ;;  %884 = vmin.xlane.f32.xlu1 %v1541_v52  ;;  %v839_v60 = vshra.s32 %v1549_v40, 16  ;;  %v853_v9 = vshra.s32 %v1552_v55, 16 }
 0x1c8   :  { %v451_v61 = vpop.xlane.xlu0 %450  ;;  %v453_v8 = vpop.xlane.xlu1 %452 }
 0x1c9   :  { %vm504_vm1 = vcmp.eq.f32.partialorder %v1361_v10, %v451_v61  ;;  %vm505_vm2 = vcmp.eq.f32.partialorder %v1365_v11, %v453_v8  ;;  %v1560_v48 = vcvt.s32.f32 %v839_v60  ;;  %v1573_v33 = vcvt.s32.f32 %v853_v9 }
 0x1ca   :  { %v1565_v4 = vsel %vm504_vm1, %v1276_v25, 128  ;;  %v1568_v5 = vsel %vm505_vm2, %v1276_v25, 128 }
 0x1cb   :  { %842 = vmin.xlane.f32.xlu0 %v1560_v48  ;;  %632 = vmin.xlane.f32.xlu1 %v1562_v49  ;;  %v699_v50 = vshra.s32 %v1565_v4, 16  ;;  %v713_v34 = vshra.s32 %v1568_v5, 16 }
 0x1cc   :  { %v483_v7 = vpop.xlane.xlu0 %482  ;;  %v485_v10 = vpop.xlane.xlu1 %484 }
 0x1cd   :  { %vm520_vm3 = vcmp.eq.f32.partialorder %v1371_v12, %v483_v7  ;;  %vm521_vm4 = vcmp.eq.f32.partialorder %v1375_v13, %v485_v10  ;;  %v1577_v11 = vcvt.s32.f32 %v699_v50  ;;  %v1594_v53 = vcvt.s32.f32 %v713_v34 }
 0x1ce   :  { %v1581_v58 = vsel %vm520_vm3, %v1276_v25, 128  ;;  %v1584_v59 = vsel %vm521_vm4, %v1276_v25, 128 }
 0x1cf   :  { %702 = vmin.xlane.f32.xlu0 %v1577_v11  ;;  %856 = vmin.xlane.f32.xlu1 %v1573_v33  ;;  %v923_v44 = vshra.s32 %v1581_v58, 16  ;;  %v937_v13 = vshra.s32 %v1584_v59, 16 }
 0x1d0   :  { %v447_v36 = vpop.xlane.xlu0 %446  ;;  %v449_v12 = vpop.xlane.xlu1 %448 }
 0x1d1   :  { %vm502_vm5 = vcmp.eq.f32.partialorder %v1381_v14, %v447_v36  ;;  %vm503_vm6 = vcmp.eq.f32.partialorder %v1385_v15, %v449_v12  ;;  %v1592_v0 = vcvt.s32.f32 %v923_v44  ;;  %v1605_v50 = vcvt.s32.f32 %v937_v13 }
 0x1d2   :  { %v1597_v60 = vsel %vm502_vm5, %v1276_v25, 128  ;;  %v1600_v61 = vsel %vm503_vm6, %v1276_v25, 128 }
 0x1d3   :  { %926 = vmin.xlane.f32.xlu0 %v1592_v0  ;;  %716 = vmin.xlane.f32.xlu1 %v1594_v53  ;;  %v671_v8 = vshra.s32 %v1597_v60, 16  ;;  %v685_v7 = vshra.s32 %v1600_v61, 16 }
 0x1d4   :  { %v479_v9 = vpop.xlane.xlu0 %478  ;;  %v481_v14 = vpop.xlane.xlu1 %480 }
 0x1d5   :  { %vm518_vm7 = vcmp.eq.f32.partialorder %v1391_v16, %v479_v9  ;;  %vm519_vm8 = vcmp.eq.f32.partialorder %v1395_v17, %v481_v14  ;;  %v1609_v15 = vcvt.s32.f32 %v671_v8  ;;  %v1626_v13 = vcvt.s32.f32 %v685_v7 }
 0x1d6   :  { %v1613_v10 = vsel %vm518_vm7, %v1276_v25, 128  ;;  %v1616_v34 = vsel %vm519_vm8, %v1276_v25, 128 }
 0x1d7   :  { %2028 = vst [vmem:[#allocation8_spill] sm:$0xff] %v1616_v34  ;;  %674 = vmin.xlane.f32.xlu0 %v1609_v15  ;;  %940 = vmin.xlane.f32.xlu1 %v1605_v50  ;;  %v895_v44 = vshra.s32 %v1613_v10, 16  ;;  %v909_v17 = vshra.s32 %v1616_v34, 16  ;;  %2029 = vst [vmem:[#allocation9_spill] sm:$0xff] %v1626_v13 }
 0x1d8   :  { %v459_v36 = vpop.xlane.xlu0 %458  ;;  %v461_v16 = vpop.xlane.xlu1 %460 }
 0x1d9   :  { %vm508_vm9 = vcmp.eq.f32.partialorder %v1401_v18, %v459_v36  ;;  %vm509_vm10 = vcmp.eq.f32.partialorder %v1405_v19, %v461_v16  ;;  %v1624_v12 = vcvt.s32.f32 %v895_v44  ;;  %v1637_v36 = vcvt.s32.f32 %v909_v17 }
 0x1da   :  { %v1629_v8 = vsel %vm508_vm9, %v1276_v25, 128  ;;  %v1632_v9 = vsel %vm509_vm10, %v1276_v25, 128 }
 0x1db   :  { %898 = vmin.xlane.f32.xlu0 %v1624_v12  ;;  %688 = vmin.xlane.f32.xlu1 %v1626_v13  ;;  %v755_v14 = vshra.s32 %v1629_v8, 16  ;;  %2030 = vst [vmem:[#allocation10_spill] sm:$0xff] %v1637_v36  ;;  %v769_v7 = vshra.s32 %v1632_v9, 16 }
 0x1dc   :  { %v455_v34 = vpop.xlane.xlu0 %454  ;;  %v457_v18 = vpop.xlane.xlu1 %456 }
 0x1dd   :  { %vm506_vm11 = vcmp.eq.f32.partialorder %v1411_v20, %v455_v34  ;;  %vm507_vm12 = vcmp.eq.f32.partialorder %v1415_v21, %v457_v18  ;;  %v1641_v19 = vcvt.s32.f32 %v755_v14  ;;  %v1658_v14 = vcvt.s32.f32 %v769_v7 }
 0x1de   :  { %v1645_v44 = vsel %vm506_vm11, %v1276_v25, 128  ;;  %v1648_v16 = vsel %vm507_vm12, %v1276_v25, 128 }
 0x1df   :  { %2031 = vst [vmem:[#allocation11_spill] sm:$0xff] %v1641_v19  ;;  %2032 = vst [vmem:[#allocation12_spill] sm:$0xff] %v1648_v16  ;;  %758 = vmin.xlane.f32.xlu0 %v1641_v19  ;;  %912 = vmin.xlane.f32.xlu1 %v1637_v36  ;;  %v727_v17 = vshra.s32 %v1645_v44, 16  ;;  %v741_v21 = vshra.s32 %v1648_v16, 16 }
 0x1e0   :  { %v487_v13 = vpop.xlane.xlu0 %486  ;;  %v489_v20 = vpop.xlane.xlu1 %488  ;;  %2033 = vst [vmem:[#allocation13_spill] sm:$0xff] %v1658_v14 }
 0x1e1   :  { %vm522_vm13 = vcmp.eq.f32.partialorder %v1421_v22, %v487_v13  ;;  %vm523_vm14 = vcmp.eq.f32.partialorder %v1425_v23, %v489_v20  ;;  %v1656_v34 = vcvt.s32.f32 %v727_v17  ;;  %v1669_v13 = vcvt.s32.f32 %v741_v21 }
 0x1e2   :  { %v1661_v18 = vsel %vm522_vm13, %v1276_v25, 128  ;;  %v1664_v19 = vsel %vm523_vm14, %v1276_v25, 128 }
 0x1e3   :  { %730 = vmin.xlane.f32.xlu0 %v1656_v34  ;;  %772 = vmin.xlane.f32.xlu1 %v1658_v14  ;;  %v951_v16 = vshra.s32 %v1661_v18, 16  ;;  %v965_v7 = vshra.s32 %v1664_v19, 16 }
 0x1e4   :  { %v491_v36 = vpop.xlane.xlu0 %490  ;;  %v493_v22 = vpop.xlane.xlu1 %492 }
 0x1e5   :  { %vm524_vm15 = vcmp.eq.f32.partialorder %v1431_v24, %v491_v36  ;;  %vm525_vm0 = vcmp.eq.f32.partialorder %v1435_v26, %v493_v22  ;;  %v1673_v23 = vcvt.s32.f32 %v951_v16  ;;  %v1687_v24 = vcvt.s32.f32 %v965_v7 }
 0x1e6   :  { %v1677_v17 = vsel %vm524_vm15, %v1276_v25, 128  ;;  %v1680_v20 = vsel %vm525_vm0, %v1276_v25, 128  ;;  %v586_v25 = vand.u32 65535, %v1445_v32  ;;  %v810_v16 = vand.u32 65535, %v1442_v29 }
 0x1e7   :  { %2034 = vst [vmem:[#allocation14_spill] sm:$0xff] %v1680_v20  ;;  %954 = vmin.xlane.f32.xlu0 %v1673_v23  ;;  %744 = vmin.xlane.f32.xlu1 %v1669_v13  ;;  %v979_v21 = vshra.s32 %v1677_v17, 16  ;;  %2036 = vst [vmem:[#allocation16_spill] sm:$0xff] %v1687_v24  ;;  %v993_v26 = vshra.s32 %v1680_v20, 16  ;;  %v600_v22 = vand.u32 65535, %v1457_v39 }
 0x1e8   :  { %v588_v7 = vcvt.s32.f32 %v586_v25  ;;  %v812_v32 = vcvt.s32.f32 %v810_v16 }
 0x1e9   :  { %v1685_v14 = vcvt.s32.f32 %v979_v21  ;;  %v1692_v36 = vcvt.s32.f32 %v993_v26  ;;  %v824_v26 = vand.u32 65535, %v1472_v47  ;;  %v602_v29 = vcvt.s32.f32 %v600_v22 }
 0x1ea   :  { %v572_v47 = vand.u32 65535, %v1488_v57  ;;  %v642_v57 = vand.u32 65535, %v1501_v2  ;;  %v866_v2 = vand.u32 65535, %v1517_v27  ;;  %v614_v27 = vand.u32 65535, %v1533_v42 }
 0x1eb   :  { %2035 = vst [vmem:[#allocation15_spill] sm:$0xff] %v1685_v14  ;;  %982 = vmin.xlane.f32.xlu0 %v1685_v14  ;;  %968 = vmin.xlane.f32.xlu1 %v1687_v24  ;;  %2037 = vst [vmem:[#allocation17_spill] sm:$0xff] %v1692_v36  ;;  %v558_v24 = vand.u32 65535, %v1454_v31  ;;  %v782_v31 = vand.u32 65535, %v1469_v46  ;;  %v826_v22 = vcvt.s32.f32 %v824_v26  ;;  %v796_v46 = vand.u32 65535, %v1485_v56 }
 0x1ec   :  { %v574_v26 = vcvt.s32.f32 %v572_v47  ;;  %v656_v56 = vand.u32 65535, %v1504_v3  ;;  %v880_v3 = vand.u32 65535, %v1520_v28  ;;  %v628_v28 = vand.u32 65535, %v1536_v43 }
 0x1ed   :  { %v560_v16 = vcvt.s32.f32 %v558_v24  ;;  %v784_v24 = vcvt.s32.f32 %v782_v31  ;;  %v798_v31 = vcvt.s32.f32 %v796_v46  ;;  %v838_v42 = vand.u32 65535, %v1549_v40 }
 0x1ee   :  { %v852_v43 = vand.u32 65535, %v1552_v55  ;;  %v698_v40 = vand.u32 65535, %v1565_v4  ;;  %v712_v55 = vand.u32 65535, %v1568_v5  ;;  %v922_v4 = vand.u32 65535, %v1581_v58 }
 0x1ef   :  { %996 = vmin.xlane.f32.xlu1 %v1692_v36  ;;  %v936_v5 = vand.u32 65535, %v1584_v59  ;;  %v670_v58 = vand.u32 65535, %v1597_v60  ;;  %v684_v59 = vand.u32 65535, %v1600_v61  ;;  %v894_v60 = vand.u32 65535, %v1613_v10 }
 0x1f0   :  { %v754_v10 = vand.u32 65535, %v1629_v8  ;;  %v726_v8 = vand.u32 65535, %v1645_v44  ;;  %v950_v44 = vand.u32 65535, %v1661_v18  ;;  %v978_v18 = vand.u32 65535, %v1677_v17 }
 0x23c   :  { %v1698_v21 = vpop.xlane.xlu0 %590 }
 0x23d   :  { %vm592_vm1 = vcmp.eq.f32.partialorder %v1450_v38, %v1698_v21 }
 0x23e   :  { %v593_v20 = vsel %vm592_vm1, %v588_v7, inf }
 0x23f   :  { %594 = vmin.xlane.f32.xlu0 %v593_v20 }
 0x240   :  { %v1704_v14 = vpop.xlane.xlu0 %814  ;;  %v1706_v36 = vpop.xlane.xlu1 %604 }
 0x241   :  { %vm816_vm2 = vcmp.eq.f32.partialorder %v1464_v37, %v1704_v14  ;;  %vm606_vm3 = vcmp.eq.f32.partialorder %v1466_v45, %v1706_v36 }
 0x242   :  { %v817_v39 = vsel %vm816_vm2, %v812_v32, inf  ;;  %v607_v38 = vsel %vm606_vm3, %v602_v29, inf }
 0x243   :  { %818 = vmin.xlane.f32.xlu0 %v817_v39  ;;  %608 = vmin.xlane.f32.xlu1 %v607_v38  ;;  %v644_v38 = vcvt.s32.f32 %v642_v57  ;;  %v616_v57 = vcvt.s32.f32 %v614_v27  ;;  %v924_v27 = vcvt.s32.f32 %v922_v4 }
 0x244   :  { %v1714_v20 = vpop.xlane.xlu0 %562  ;;  %v1716_v25 = vpop.xlane.xlu1 %828 }
 0x245   :  { %vm564_vm4 = vcmp.eq.f32.partialorder %v1477_v54, %v1714_v20  ;;  %vm830_vm5 = vcmp.eq.f32.partialorder %v1481_v41, %v1716_v25 }
 0x246   :  { %v565_v37 = vsel %vm564_vm4, %v560_v16, inf  ;;  %v831_v45 = vsel %vm830_vm5, %v826_v22, inf  ;;  %v868_v22 = vcvt.s32.f32 %v866_v2 }
 0x247   :  { %566 = vmin.xlane.f32.xlu0 %v565_v37  ;;  %832 = vmin.xlane.f32.xlu1 %v831_v45  ;;  %v658_v37 = vcvt.s32.f32 %v656_v56  ;;  %v630_v56 = vcvt.s32.f32 %v628_v28  ;;  %v938_v28 = vcvt.s32.f32 %v936_v5  ;;  %v728_v5 = vcvt.s32.f32 %v726_v8 }
 0x248   :  { %v1724_v7 = vpop.xlane.xlu0 %786  ;;  %v1726_v32 = vpop.xlane.xlu1 %576  ;;  %v597_v8 = vcvt.f32.s32 %v1698_v21 }
 0x249   :  { %vm788_vm6 = vcmp.eq.f32.partialorder %v1496_v62, %v1724_v7  ;;  %vm578_vm7 = vcmp.eq.f32.partialorder %v1498_v63, %v1726_v32 }
 0x24a   :  { %v789_v54 = vsel %vm788_vm6, %v784_v24, inf  ;;  %v579_v41 = vsel %vm578_vm7, %v574_v26, inf  ;;  %v882_v24 = vcvt.s32.f32 %v880_v3 }
 0x24b   :  { %790 = vmin.xlane.f32.xlu0 %v789_v54  ;;  %580 = vmin.xlane.f32.xlu1 %v579_v41  ;;  %v840_v41 = vcvt.s32.f32 %v838_v42  ;;  %v2038_v42 = vld [vmem:[#allocation8_spill] sm:$0xff] }
 0x24c   :  { %v1734_v29 = vpop.xlane.xlu0 %646  ;;  %v1736_v39 = vpop.xlane.xlu1 %800  ;;  %v908_v61 = vand.u32 65535, %v2038_v42 }
 0x24d   :  { %vm648_vm8 = vcmp.eq.f32.partialorder %v1513_v51, %v1734_v29  ;;  %vm802_vm9 = vcmp.eq.f32.partialorder %v1509_v6, %v1736_v39 }
 0x24e   :  { %v649_v62 = vsel %vm648_vm8, %v644_v38, inf  ;;  %v803_v63 = vsel %vm802_vm9, %v798_v31, inf  ;;  %v700_v31 = vcvt.s32.f32 %v698_v40  ;;  %v768_v40 = vand.u32 65535, %v1632_v9 }
 0x24f   :  { %650 = vmin.xlane.f32.xlu0 %v649_v62  ;;  %804 = vmin.xlane.f32.xlu1 %v803_v63  ;;  %v854_v62 = vcvt.s32.f32 %v852_v43 }
 0x250   :  { %v1744_v47 = vpop.xlane.xlu0 %870  ;;  %v1746_v16 = vpop.xlane.xlu1 %660 }
 0x251   :  { %vm872_vm10 = vcmp.eq.f32.partialorder %v1528_v35, %v1744_v47  ;;  %vm662_vm11 = vcmp.eq.f32.partialorder %v1530_v30, %v1746_v16 }
 0x252   :  { %v873_v6 = vsel %vm872_vm10, %v868_v22, inf  ;;  %v663_v51 = vsel %vm662_vm11, %v658_v37, inf  ;;  %v714_v22 = vcvt.s32.f32 %v712_v55  ;;  %v2040_v55 = vld [vmem:[#allocation11_spill] sm:$0xff] }
 0x253   :  { %874 = vmin.xlane.f32.xlu0 %v873_v6  ;;  %664 = vmin.xlane.f32.xlu1 %v663_v51  ;;  %v672_v51 = vcvt.s32.f32 %v670_v58  ;;  %v770_v58 = vcvt.s32.f32 %v768_v40 }
 0x254   :  { %v1754_v45 = vpop.xlane.xlu0 %618  ;;  %v1756_v46 = vpop.xlane.xlu1 %884 }
 0x255   :  { %vm620_vm12 = vcmp.eq.f32.partialorder %v1545_v1, %v1754_v45  ;;  %vm886_vm13 = vcmp.eq.f32.partialorder %v1541_v52, %v1756_v46 }
 0x256   :  { %v621_v35 = vsel %vm620_vm12, %v616_v57, inf  ;;  %v887_v30 = vsel %vm886_vm13, %v882_v24, inf }
 0x257   :  { %622 = vmin.xlane.f32.xlu0 %v621_v35  ;;  %888 = vmin.xlane.f32.xlu1 %v887_v30  ;;  %v896_v35 = vcvt.s32.f32 %v894_v60  ;;  %v686_v30 = vcvt.s32.f32 %v684_v59 }
 0x258   :  { %v1764_v26 = vpop.xlane.xlu0 %842  ;;  %v1766_v54 = vpop.xlane.xlu1 %632 }
 0x259   :  { %vm844_vm14 = vcmp.eq.f32.partialorder %v1560_v48, %v1764_v26  ;;  %vm634_vm15 = vcmp.eq.f32.partialorder %v1562_v49, %v1766_v54 }
 0x25a   :  { %v845_v52 = vsel %vm844_vm14, %v840_v41, inf  ;;  %v635_v1 = vsel %vm634_vm15, %v630_v56, inf }
 0x25b   :  { %846 = vmin.xlane.f32.xlu0 %v845_v52  ;;  %636 = vmin.xlane.f32.xlu1 %v635_v1  ;;  %v756_v52 = vcvt.s32.f32 %v754_v10  ;;  %v910_v1 = vcvt.s32.f32 %v908_v61  ;;  %v980_v61 = vcvt.s32.f32 %v978_v18 }
 0x25c   :  { %v1774_v2 = vpop.xlane.xlu0 %702  ;;  %v1776_v38 = vpop.xlane.xlu1 %856 }
 0x25d   :  { %vm704_vm0 = vcmp.eq.f32.partialorder %v1577_v11, %v1774_v2  ;;  %vm858_vm1 = vcmp.eq.f32.partialorder %v1573_v33, %v1776_v38 }
 0x25e   :  { %v705_v48 = vsel %vm704_vm0, %v700_v31, inf  ;;  %v859_v49 = vsel %vm858_vm1, %v854_v62, inf  ;;  %v2042_v62 = vld [vmem:[#allocation12_spill] sm:$0xff]  ;;  %vm1006_vm1 = vcmask 7168  }
 0x25f   :  { %706 = vmin.xlane.f32.xlu0 %v705_v48  ;;  %860 = vmin.xlane.f32.xlu1 %v859_v49  ;;  %v740_v9 = vand.u32 65535, %v2042_v62 }
 0x260   :  { %v1784_v63 = vpop.xlane.xlu0 %926  ;;  %v1786_v3 = vpop.xlane.xlu1 %716 }
 0x261   :  { %vm928_vm2 = vcmp.eq.f32.partialorder %v1592_v0, %v1784_v63  ;;  %vm718_vm3 = vcmp.eq.f32.partialorder %v1594_v53, %v1786_v3 }
 0x262   :  { %v929_v33 = vsel %vm928_vm2, %v924_v27, inf  ;;  %v719_v11 = vsel %vm718_vm3, %v714_v22, inf  ;;  %v2043_v27 = vld [vmem:[#allocation13_spill] sm:$0xff] }
 0x263   :  { %930 = vmin.xlane.f32.xlu0 %v929_v33  ;;  %720 = vmin.xlane.f32.xlu1 %v719_v11  ;;  %v964_v11 = vand.u32 65535, %v1664_v19 }
 0x264   :  { %v1794_v37 = vpop.xlane.xlu0 %674  ;;  %v1796_v6 = vpop.xlane.xlu1 %940 }
 0x265   :  { %vm676_vm4 = vcmp.eq.f32.partialorder %v1609_v15, %v1794_v37  ;;  %vm942_vm5 = vcmp.eq.f32.partialorder %v1605_v50, %v1796_v6  ;;  %v2039_v15 = vld [vmem:[#allocation9_spill] sm:$0xff]  ;;  %v966_v10 = vcvt.s32.f32 %v964_v11  ;;  %v793_v11 = vcvt.f32.s32 %v1724_v7 }
 0x266   :  { %v677_v0 = vsel %vm676_vm4, %v672_v51, inf  ;;  %v943_v53 = vsel %vm942_vm5, %v938_v28, inf  ;;  %v952_v51 = vcvt.s32.f32 %v950_v44  ;;  %v742_v28 = vcvt.s32.f32 %v740_v9 }
 0x267   :  { %678 = vmin.xlane.f32.xlu0 %v677_v0  ;;  %944 = vmin.xlane.f32.xlu1 %v943_v53  ;;  %v2044_v53 = vld [vmem:[#allocation14_spill] sm:$0xff]  ;;  %v569_v9 = vcvt.f32.s32 %v1714_v20  ;;  %v794_v7 = vshll.u32 %v793_v11, 16 }
 0x268   :  { %v1804_v57 = vpop.xlane.xlu0 %898  ;;  %v1806_v24 = vpop.xlane.xlu1 %688  ;;  %v992_v19 = vand.u32 65535, %v2044_v53 }
 0x269   :  { %vm900_vm6 = vcmp.eq.f32.partialorder %v1624_v12, %v1804_v57  ;;  %vm690_vm7 = vcmp.eq.f32.partialorder %v2039_v15, %v1806_v24  ;;  %v2041_v12 = vld [vmem:[#allocation10_spill] sm:$0xff] }
 0x26a   :  { %v901_v50 = vsel %vm900_vm6, %v896_v35, inf  ;;  %v691_v43 = vsel %vm690_vm7, %v686_v30, inf  ;;  %v2045_v35 = vld [vmem:[#allocation15_spill] sm:$0xff] }
 0x26b   :  { %902 = vmin.xlane.f32.xlu0 %v901_v50  ;;  %692 = vmin.xlane.f32.xlu1 %v691_v43  ;;  %v994_v50 = vcvt.s32.f32 %v992_v19  ;;  %v2047_v43 = vld [vmem:[#allocation17_spill] sm:$0xff]  ;;  %v653_v19 = vcvt.f32.s32 %v1734_v29 }
 0x26c   :  { %v1814_v41 = vpop.xlane.xlu0 %758  ;;  %v1816_v56 = vpop.xlane.xlu1 %912 }
 0x26d   :  { %vm760_vm8 = vcmp.eq.f32.partialorder %v2040_v55, %v1814_v41  ;;  %vm914_vm9 = vcmp.eq.f32.partialorder %v2041_v12, %v1816_v56  ;;  %v598_v55 = vshll.u32 %v597_v8, 16  ;;  %v611_v12 = vcvt.f32.s32 %v1706_v36 }
 0x26e   :  { %v761_v4 = vsel %vm760_vm8, %v756_v52, inf  ;;  %v915_v31 = vsel %vm914_vm9, %v910_v1, inf  ;;  %v821_v52 = vcvt.f32.s32 %v1704_v14  ;;  %v654_v29 = vshll.u32 %v653_v19, 16 }
 0x26f   :  { %762 = vmin.xlane.f32.xlu0 %v761_v4  ;;  %916 = vmin.xlane.f32.xlu1 %v915_v31 }
 0x270   :  { %v1824_v48 = vpop.xlane.xlu0 %730  ;;  %v1826_v49 = vpop.xlane.xlu1 %772  ;;  %v822_v62 = vshll.u32 %v821_v52, 16  ;;  %v667_v52 = vcvt.f32.s32 %v1746_v16 }
 0x271   :  { %vm732_vm10 = vcmp.eq.f32.partialorder %v1656_v34, %v1824_v48  ;;  %vm774_vm11 = vcmp.eq.f32.partialorder %v2043_v27, %v1826_v49  ;;  %v835_v27 = vcvt.f32.s32 %v1716_v25 }
 0x272   :  { %v733_v22 = vsel %vm732_vm10, %v728_v5, inf  ;;  %v775_v33 = vsel %vm774_vm11, %v770_v58, inf  ;;  %v612_v58 = vshll.u32 %v611_v12, 16  ;;  %v668_v16 = vshll.u32 %v667_v52, 16 }
 0x273   :  { %734 = vmin.xlane.f32.xlu0 %v733_v22  ;;  %776 = vmin.xlane.f32.xlu1 %v775_v33  ;;  %v570_v33 = vshll.u32 %v569_v9, 16  ;;  %v836_v20 = vshll.u32 %v835_v27, 16 }
 0x274   :  { %v1834_v59 = vpop.xlane.xlu0 %954  ;;  %v1836_v60 = vpop.xlane.xlu1 %744 }
 0x275   :  { %vm956_vm12 = vcmp.eq.f32.partialorder %v1673_v23, %v1834_v59  ;;  %vm746_vm13 = vcmp.eq.f32.partialorder %v1669_v13, %v1836_v60  ;;  %v2046_v23 = vld [vmem:[#allocation16_spill] sm:$0xff] }
 0x276   :  { %v957_v34 = vsel %vm956_vm12, %v952_v51, inf  ;;  %v747_v0 = vsel %vm746_vm13, %v742_v28, inf  ;;  %v583_v28 = vcvt.f32.s32 %v1726_v32 }
 0x277   :  { %958 = vmin.xlane.f32.xlu0 %v957_v34  ;;  %748 = vmin.xlane.f32.xlu1 %v747_v0 }
 0x278   :  { %v1843_v42 = vpop.xlane.xlu0 %982  ;;  %v1845_v17 = vpop.xlane.xlu1 %968  ;;  %v584_v32 = vshll.u32 %v583_v28, 16  ;;  %v709_v28 = vcvt.f32.s32 %v1774_v2 }
 0x279   :  { %vm984_vm14 = vcmp.eq.f32.partialorder %v2045_v35, %v1843_v42  ;;  %vm970_vm15 = vcmp.eq.f32.partialorder %v2046_v23, %v1845_v17  ;;  %v807_v35 = vcvt.f32.s32 %v1736_v39 }
 0x27a   :  { %v985_v30 = vsel %vm984_vm14, %v980_v61, inf  ;;  %v971_v13 = vsel %vm970_vm15, %v966_v10, inf  ;;  %v710_v2 = vshll.u32 %v709_v28, 16 }
 0x27b   :  { %986 = vmin.xlane.f32.xlu0 %v985_v30  ;;  %972 = vmin.xlane.f32.xlu1 %v971_v13  ;;  %v808_v39 = vshll.u32 %v807_v35, 16 }
 0x27c   :  { %v1851_v15 = vpop.xlane.xlu1 %996 }
 0x27d   :  { %vm998_vm0 = vcmp.eq.f32.partialorder %v2047_v43, %v1851_v15  ;;  %v877_v43 = vcvt.f32.s32 %v1744_v47 }
 0x27e   :  { %v999_v40 = vsel %vm998_vm0, %v994_v50, inf }
 0x27f   :  { %1000 = vmin.xlane.f32.xlu1 %v999_v40  ;;  %v878_v47 = vshll.u32 %v877_v43, 16  ;;  %v681_v43 = vcvt.f32.s32 %v1794_v37 }
 0x281   :  { %v682_v37 = vshll.u32 %v681_v43, 16 }
 0x2cc   :  { %v595_v1 = vpop.xlane.xlu0 %594 }
 0x2cd   :  { %v596_v4 = vcvt.f32.s32 %v595_v1 }
 0x2cf   :  { %v599_v31 = vadd.s32 %v598_v55, %v596_v4 }
 0x2d0   :  { %v819_v44 = vpop.xlane.xlu0 %818  ;;  %v609_v5 = vpop.xlane.xlu1 %608 }
 0x2d1   :  { %1009 = vst.msk [vmem:[%s2017_s2 + $0x10] sm:$0xff] %vm1006_vm1, %v599_v31  ;;  %v820_v14 = vcvt.f32.s32 %v819_v44  ;;  %v610_v21 = vcvt.f32.s32 %v609_v5  ;;  %v625_v31 = vcvt.f32.s32 %v1754_v45  ;;  %v891_v44 = vcvt.f32.s32 %v1756_v46 }
 0x2d3   :  { %v823_v22 = vadd.s32 %v822_v62, %v820_v14  ;;  %v613_v36 = vadd.s32 %v612_v58, %v610_v21  ;;  %v626_v45 = vshll.u32 %v625_v31, 16  ;;  %v849_v21 = vcvt.f32.s32 %v1764_v26 }
 0x2d4   :  { %v567_v18 = vpop.xlane.xlu0 %566  ;;  %v833_v51 = vpop.xlane.xlu1 %832  ;;  %v892_v46 = vshll.u32 %v891_v44, 16 }
 0x2d5   :  { %1025 = vst.msk [vmem:[%s2017_s2 + $0x90] sm:$0xff] %vm1006_vm1, %v823_v22  ;;  %1010 = vst.msk [vmem:[%s2017_s2 + $0x18] sm:$0xff] %vm1006_vm1, %v613_v36  ;;  %v568_v25 = vcvt.f32.s32 %v567_v18  ;;  %v834_v34 = vcvt.f32.s32 %v833_v51  ;;  %v850_v26 = vshll.u32 %v849_v21, 16 }
 0x2d7   :  { %v571_v0 = vadd.s32 %v570_v33, %v568_v25  ;;  %v837_v53 = vadd.s32 %v836_v20, %v834_v34  ;;  %v639_v33 = vcvt.f32.s32 %v1766_v54 }
 0x2d8   :  { %v791_v61 = vpop.xlane.xlu0 %790  ;;  %v581_v10 = vpop.xlane.xlu1 %580 }
 0x2d9   :  { %1007 = vst.msk [vmem:[%s2017_s2] sm:$0xff] %vm1006_vm1, %v571_v0  ;;  %1026 = vst.msk [vmem:[%s2017_s2 + $0x98] sm:$0xff] %vm1006_vm1, %v837_v53  ;;  %v792_v23 = vcvt.f32.s32 %v791_v61  ;;  %v582_v30 = vcvt.f32.s32 %v581_v10  ;;  %v640_v54 = vshll.u32 %v639_v33, 16  ;;  %v863_v0 = vcvt.f32.s32 %v1776_v38 }
 0x2da   :  { %v933_v10 = vcvt.f32.s32 %v1784_v63  ;;  %v737_v33 = vcvt.f32.s32 %v1824_v48 }
 0x2db   :  { %v795_v13 = vadd.s32 %v794_v7, %v792_v23  ;;  %v585_v50 = vadd.s32 %v584_v32, %v582_v30  ;;  %v864_v38 = vshll.u32 %v863_v0, 16  ;;  %v723_v23 = vcvt.f32.s32 %v1786_v3 }
 0x2dc   :  { %v651_v40 = vpop.xlane.xlu0 %650  ;;  %v805_v8 = vpop.xlane.xlu1 %804  ;;  %v934_v63 = vshll.u32 %v933_v10, 16  ;;  %v738_v48 = vshll.u32 %v737_v33, 16  ;;  %v989_v10 = vcvt.f32.s32 %v1843_v42 }
 0x2dd   :  { %1023 = vst.msk [vmem:[%s2017_s2 + $0x80] sm:$0xff] %vm1006_vm1, %v795_v13  ;;  %1008 = vst.msk [vmem:[%s2017_s2 + $0x8] sm:$0xff] %vm1006_vm1, %v585_v50  ;;  %v652_v1 = vcvt.f32.s32 %v651_v40  ;;  %v806_v55 = vcvt.f32.s32 %v805_v8  ;;  %v724_v3 = vshll.u32 %v723_v23, 16 }
 0x2de   :  { %v990_v42 = vshll.u32 %v989_v10, 16 }
 0x2df   :  { %v655_v12 = vadd.s32 %v654_v29, %v652_v1  ;;  %v809_v4 = vadd.s32 %v808_v39, %v806_v55  ;;  %v947_v39 = vcvt.f32.s32 %v1796_v6 }
 0x2e0   :  { %v875_v62 = vpop.xlane.xlu0 %874  ;;  %v665_v9 = vpop.xlane.xlu1 %664 }
 0x2e1   :  { %1013 = vst.msk [vmem:[%s2017_s2 + $0x30] sm:$0xff] %vm1006_vm1, %v655_v12  ;;  %1024 = vst.msk [vmem:[%s2017_s2 + $0x88] sm:$0xff] %vm1006_vm1, %v809_v4  ;;  %v876_v5 = vcvt.f32.s32 %v875_v62  ;;  %v666_v58 = vcvt.f32.s32 %v665_v9  ;;  %v905_v4 = vcvt.f32.s32 %v1804_v57  ;;  %v948_v6 = vshll.u32 %v947_v39, 16 }
 0x2e2   :  { %v695_v62 = vcvt.f32.s32 %v1806_v24 }
 0x2e3   :  { %v879_v27 = vadd.s32 %v878_v47, %v876_v5  ;;  %v669_v14 = vadd.s32 %v668_v16, %v666_v58  ;;  %v906_v57 = vshll.u32 %v905_v4, 16  ;;  %v765_v58 = vcvt.f32.s32 %v1814_v41 }
 0x2e4   :  { %v623_v22 = vpop.xlane.xlu0 %622  ;;  %v889_v36 = vpop.xlane.xlu1 %888  ;;  %v696_v24 = vshll.u32 %v695_v62, 16 }
 0x2e5   :  { %1029 = vst.msk [vmem:[%s2017_s2 + $0xb0] sm:$0xff] %vm1006_vm1, %v879_v27  ;;  %1014 = vst.msk [vmem:[%s2017_s2 + $0x38] sm:$0xff] %vm1006_vm1, %v669_v14  ;;  %v624_v11 = vcvt.f32.s32 %v623_v22  ;;  %v890_v18 = vcvt.f32.s32 %v889_v36  ;;  %v766_v41 = vshll.u32 %v765_v58, 16 }
 0x2e7   :  { %v627_v51 = vadd.s32 %v626_v45, %v624_v11  ;;  %v893_v20 = vadd.s32 %v892_v46, %v890_v18  ;;  %v919_v45 = vcvt.f32.s32 %v1816_v56 }
 0x2e8   :  { %v847_v25 = vpop.xlane.xlu0 %846  ;;  %v637_v34 = vpop.xlane.xlu1 %636 }
 0x2e9   :  { %1011 = vst.msk [vmem:[%s2017_s2 + $0x20] sm:$0xff] %vm1006_vm1, %v627_v51  ;;  %1030 = vst.msk [vmem:[%s2017_s2 + $0xb8] sm:$0xff] %vm1006_vm1, %v893_v20  ;;  %v848_v53 = vcvt.f32.s32 %v847_v25  ;;  %v638_v7 = vcvt.f32.s32 %v637_v34  ;;  %v920_v56 = vshll.u32 %v919_v45, 16  ;;  %v779_v51 = vcvt.f32.s32 %v1826_v49 }
 0x2ea   :  { %v961_v34 = vcvt.f32.s32 %v1834_v59 }
 0x2eb   :  { %v851_v19 = vadd.s32 %v850_v26, %v848_v53  ;;  %v641_v61 = vadd.s32 %v640_v54, %v638_v7  ;;  %v780_v49 = vshll.u32 %v779_v51, 16  ;;  %v751_v53 = vcvt.f32.s32 %v1836_v60 }
 0x2ec   :  { %v707_v32 = vpop.xlane.xlu0 %706  ;;  %v861_v35 = vpop.xlane.xlu1 %860  ;;  %v962_v59 = vshll.u32 %v961_v34, 16 }
 0x2ed   :  { %1027 = vst.msk [vmem:[%s2017_s2 + $0xa0] sm:$0xff] %vm1006_vm1, %v851_v19  ;;  %1012 = vst.msk [vmem:[%s2017_s2 + $0x28] sm:$0xff] %vm1006_vm1, %v641_v61  ;;  %v708_v30 = vcvt.f32.s32 %v707_v32  ;;  %v862_v13 = vcvt.f32.s32 %v861_v35  ;;  %v752_v60 = vshll.u32 %v751_v53, 16 }
 0x2ef   :  { %v711_v50 = vadd.s32 %v710_v2, %v708_v30  ;;  %v865_v29 = vadd.s32 %v864_v38, %v862_v13  ;;  %v975_v38 = vcvt.f32.s32 %v1845_v17  ;;  %v1003_v17 = vcvt.f32.s32 %v1851_v15 }
 0x2f0   :  { %v931_v40 = vpop.xlane.xlu0 %930  ;;  %v721_v8 = vpop.xlane.xlu1 %720 }
 0x2f1   :  { %1017 = vst.msk [vmem:[%s2017_s2 + $0x50] sm:$0xff] %vm1006_vm1, %v711_v50  ;;  %1028 = vst.msk [vmem:[%s2017_s2 + $0xa8] sm:$0xff] %vm1006_vm1, %v865_v29  ;;  %v932_v52 = vcvt.f32.s32 %v931_v40  ;;  %v722_v1 = vcvt.f32.s32 %v721_v8  ;;  %v976_v43 = vshll.u32 %v975_v38, 16 }
 0x2f3   :  { %v935_v55 = vadd.s32 %v934_v63, %v932_v52  ;;  %v725_v12 = vadd.s32 %v724_v3, %v722_v1  ;;  %v1004_v1 = vshll.u32 %v1003_v17, 16 }
 0x2f4   :  { %v679_v47 = vpop.xlane.xlu0 %678  ;;  %v945_v31 = vpop.xlane.xlu1 %944 }
 0x2f5   :  { %1033 = vst.msk [vmem:[%s2017_s2 + $0xd0] sm:$0xff] %vm1006_vm1, %v935_v55  ;;  %1018 = vst.msk [vmem:[%s2017_s2 + $0x58] sm:$0xff] %vm1006_vm1, %v725_v12  ;;  %v680_v9 = vcvt.f32.s32 %v679_v47  ;;  %v946_v16 = vcvt.f32.s32 %v945_v31 }
 0x2f7   :  { %v683_v44 = vadd.s32 %v682_v37, %v680_v9  ;;  %v949_v5 = vadd.s32 %v948_v6, %v946_v16 }
 0x2f8   :  { %v903_v27 = vpop.xlane.xlu0 %902  ;;  %v693_v14 = vpop.xlane.xlu1 %692 }
 0x2f9   :  { %1015 = vst.msk [vmem:[%s2017_s2 + $0x40] sm:$0xff] %vm1006_vm1, %v683_v44  ;;  %1034 = vst.msk [vmem:[%s2017_s2 + $0xd8] sm:$0xff] %vm1006_vm1, %v949_v5  ;;  %v904_v21 = vcvt.f32.s32 %v903_v27  ;;  %v694_v22 = vcvt.f32.s32 %v693_v14 }
 0x2fb   :  { %v907_v36 = vadd.s32 %v906_v57, %v904_v21  ;;  %v697_v46 = vadd.s32 %v696_v24, %v694_v22 }
 0x2fc   :  { %v763_v11 = vpop.xlane.xlu0 %762  ;;  %v917_v18 = vpop.xlane.xlu1 %916 }
 0x2fd   :  { %1031 = vst.msk [vmem:[%s2017_s2 + $0xc0] sm:$0xff] %vm1006_vm1, %v907_v36  ;;  %1016 = vst.msk [vmem:[%s2017_s2 + $0x48] sm:$0xff] %vm1006_vm1, %v697_v46  ;;  %v764_v20 = vcvt.f32.s32 %v763_v11  ;;  %v918_v26 = vcvt.f32.s32 %v917_v18 }
 0x2ff   :  { %v767_v28 = vadd.s32 %v766_v41, %v764_v20  ;;  %v921_v25 = vadd.s32 %v920_v56, %v918_v26 }
 0x300   :  { %v735_v54 = vpop.xlane.xlu0 %734  ;;  %v777_v0 = vpop.xlane.xlu1 %776 }
 0x301   :  { %1021 = vst.msk [vmem:[%s2017_s2 + $0x70] sm:$0xff] %vm1006_vm1, %v767_v28  ;;  %1032 = vst.msk [vmem:[%s2017_s2 + $0xc8] sm:$0xff] %vm1006_vm1, %v921_v25  ;;  %v736_v7 = vcvt.f32.s32 %v735_v54  ;;  %v778_v19 = vcvt.f32.s32 %v777_v0 }
 0x303   :  { %v739_v61 = vadd.s32 %v738_v48, %v736_v7  ;;  %v781_v2 = vadd.s32 %v780_v49, %v778_v19 }
 0x304   :  { %v959_v32 = vpop.xlane.xlu0 %958  ;;  %v749_v35 = vpop.xlane.xlu1 %748 }
 0x305   :  { %1019 = vst.msk [vmem:[%s2017_s2 + $0x60] sm:$0xff] %vm1006_vm1, %v739_v61  ;;  %1022 = vst.msk [vmem:[%s2017_s2 + $0x78] sm:$0xff] %vm1006_vm1, %v781_v2  ;;  %v960_v23 = vcvt.f32.s32 %v959_v32  ;;  %v750_v30 = vcvt.f32.s32 %v749_v35 }
 0x307   :  { %v963_v13 = vadd.s32 %v962_v59, %v960_v23  ;;  %v753_v50 = vadd.s32 %v752_v60, %v750_v30 }
 0x308   :  { %v987_v29 = vpop.xlane.xlu0 %986  ;;  %v973_v63 = vpop.xlane.xlu1 %972 }
 0x309   :  { %1035 = vst.msk [vmem:[%s2017_s2 + $0xe0] sm:$0xff] %vm1006_vm1, %v963_v13  ;;  %1020 = vst.msk [vmem:[%s2017_s2 + $0x68] sm:$0xff] %vm1006_vm1, %v753_v50  ;;  %v988_v40 = vcvt.f32.s32 %v987_v29  ;;  %v974_v8 = vcvt.f32.s32 %v973_v63 }
 0x30b   :  { %v991_v3 = vadd.s32 %v990_v42, %v988_v40  ;;  %v977_v39 = vadd.s32 %v976_v43, %v974_v8 }
 0x30c   :  { %v1001_v52 = vpop.xlane.xlu1 %1000 }
 0x30d   :  { %1037 = vst.msk [vmem:[%s2017_s2 + $0xf0] sm:$0xff] %vm1006_vm1, %v991_v3  ;;  %1036 = vst.msk [vmem:[%s2017_s2 + $0xe8] sm:$0xff] %vm1006_vm1, %v977_v39  ;;  %v1002_v15 = vcvt.f32.s32 %v1001_v52 }
 0x30f   :  { %v1005_v55 = vadd.s32 %v1004_v1, %v1002_v15 }
 0x311   :  { %1038 = vst.msk [vmem:[%s2017_s2 + $0xf8] sm:$0xff] %vm1006_vm1, %v1005_v55 }
 0x312   :  { %1043 = vsyncpa [#allocation3], 1 }
 0x313   :  { %1044 = vsyncpa [#allocation5], 1 }

</bundles_post_ra>
